<compile_context>
chip_gen: v7x
topology: tpu7x:2x2x1
jax: 0.10.0
libtpu: 0.0.40
codegen_flags: <defaults>
</compile_context>

<pallas_src>
import jax
import jax.numpy as jnp
from jax import lax
from jax.experimental import pallas as pl
from jax.experimental.pallas import tpu as pltpu


# ----------------------------------------------------------------------------
# shared helper: zero-pad a (Ho, Wo, Cin) tile in VMEM, build the im2col
# matrix once, run a single K = 9*Cin MXU matmul (bf16 in, f32 accumulate).
# ----------------------------------------------------------------------------
def _conv3x3_im2col(xp_ref, tile, w_ref):
    Hp, Wp, Cin = xp_ref.shape
    Ho, Wo = Hp - 2, Wp - 2
    xp_ref[...] = jnp.zeros(xp_ref.shape, xp_ref.dtype)        # halo only in VMEM
    xp_ref[1:Ho + 1, 1:Wo + 1, :] = tile
    slabs = [xp_ref[dy:dy + Ho, dx:dx + Wo, :]
             for dy in range(3) for dx in range(3)]            # 9 shifted views
    patches = jnp.concatenate(slabs, axis=-1).reshape(Ho * Wo, 9 * Cin)
    return jnp.dot(patches.astype(jnp.bfloat16), w_ref[...],   # one MXU matmul
                   preferred_element_type=jnp.float32)         # (Ho*Wo, Cout) f32


# ----------------------------------------------------------------------------
# call 1: MaxPool2d(2,2) + Conv1 + BN1 partial statistics
# ----------------------------------------------------------------------------
def _pool_conv_stats_kernel(x_ref, w_ref, o_ref, psum_ref, psq_ref, xp_ref):
    # x_ref : (Ho, 2, Wo, 2, Cin)  pool-window view of one image (f32)
    # w_ref : (9*Cin, C1)          flattened conv1 weights (bf16)
    # o_ref : (1, Ho, Wo, C1)      raw conv1 output (pre-BN, f32)
    # psum_ref / psq_ref : (1, 1, C1)  per-image partial BN sums
    Ho, _, Wo, _, _ = x_ref.shape
    C1 = o_ref.shape[-1]

    x = x_ref[...]
    m = jnp.maximum(x[:, 0], x[:, 1])                # reduce 2-row window
    pooled = jnp.maximum(m[:, :, 0], m[:, :, 1])     # reduce 2-col window -> (Ho, Wo, Cin)

    acc = _conv3x3_im2col(xp_ref, pooled, w_ref)     # (Ho*Wo, C1) f32
    # conv bias omitted: exactly cancelled by training-mode BN mean subtraction.
    o_ref[0] = acc.reshape(Ho, Wo, C1)
    psum_ref[0] = jnp.sum(acc, axis=0, keepdims=True)
    psq_ref[0] = jnp.sum(acc * acc, axis=0, keepdims=True)


# ----------------------------------------------------------------------------
# call 2: BN1 apply + ReLU + Conv2 + BN2 partial statistics
# ----------------------------------------------------------------------------
def _bn_relu_conv_stats_kernel(y_ref, s_ref, b_ref, w_ref,
                               o_ref, psum_ref, psq_ref, xp_ref):
    # y_ref : (1, Ho, Wo, C1)  raw conv1 output
    # s_ref / b_ref : (1, C1)  fused BN1 scale / bias
    # w_ref : (9*C1, C2)       flattened conv2 weights (bf16)
    # o_ref : (1, Ho*Wo, C2)   raw conv2 output (pre-BN, f32)
    y = y_ref[0]
    s = s_ref[...].reshape(1, 1, -1)
    b = b_ref[...].reshape(1, 1, -1)
    a = jnp.maximum(y * s + b, 0.0)                  # BN1 (batch stats) + ReLU

    acc = _conv3x3_im2col(xp_ref, a, w_ref)          # (Ho*Wo, C2) f32
    o_ref[0] = acc
    psum_ref[0] = jnp.sum(acc, axis=0, keepdims=True)
    psq_ref[0] = jnp.sum(acc * acc, axis=0, keepdims=True)


# ----------------------------------------------------------------------------
# call 3: BN2 apply + ReLU on a lane-dense 2-D view (rows, Wo*C2)
# ----------------------------------------------------------------------------
def _bn_relu_kernel(y_ref, s_ref, b_ref, o_ref):
    o_ref[...] = jnp.maximum(y_ref[...] * s_ref[...] + b_ref[...], 0.0)


# ----------------------------------------------------------------------------
# host-side BN finalization (tiny per-channel vectors only)
# ----------------------------------------------------------------------------
def _bn_affine(psum, psq, gamma, beta, count, eps=1e-5):
    s = jnp.sum(psum, axis=(0, 1))
    q = jnp.sum(psq, axis=(0, 1))
    mean = s / count
    var = q / count - mean * mean        # biased variance (PyTorch BN train norm)
    scale = gamma * lax.rsqrt(var + eps)
    return scale, beta - mean * scale


# ----------------------------------------------------------------------------
# UNetDown: params + forward
# ----------------------------------------------------------------------------
def init_params(key, in_channels, out_channels):
    k1, k2 = jax.random.split(key)

    def conv_init(k, cin, cout):                     # kaiming-uniform-like
        fan_in = cin * 9
        bound = 1.0 / jnp.sqrt(fan_in)
        kw, kb = jax.random.split(k)
        w = jax.random.uniform(kw, (3, 3, cin, cout), jnp.float32, -bound, bound)  # HWIO
        b = jax.random.uniform(kb, (cout,), jnp.float32, -bound, bound)
        return w, b

    w1, b1 = conv_init(k1, in_channels, out_channels)
    w2, b2 = conv_init(k2, out_channels, out_channels)
    ones = jnp.ones((out_channels,), jnp.float32)
    zeros = jnp.zeros((out_channels,), jnp.float32)
    return dict(w1=w1, b1=b1, g1=ones, be1=zeros,
                w2=w2, b2=b2, g2=ones, be2=zeros)


def unet_down(params, x_nchw):
    N, Cin, H, W = x_nchw.shape
    Ho, Wo = H // 2, W // 2
    C1 = params["w1"].shape[-1]
    C2 = params["w2"].shape[-1]

    x = jnp.transpose(x_nchw, (0, 2, 3, 1))                    # NCHW -> NHWC
    x5 = x.reshape(N * Ho, 2, Wo, 2, Cin)                      # pool-window view
    w1f = params["w1"].reshape(9 * Cin, C1).astype(jnp.bfloat16)
    w2f = params["w2"].reshape(9 * C1, C2).astype(jnp.bfloat16)

    # --- call 1: pool + conv1 + BN1 stats --------------------------------
    y1, ps1, pq1 = pl.pallas_call(
        _pool_conv_stats_kernel,
        out_shape=(jax.ShapeDtypeStruct((N, Ho, Wo, C1), jnp.float32),
                   jax.ShapeDtypeStruct((N, 1, C1), jnp.float32),
                   jax.ShapeDtypeStruct((N, 1, C1), jnp.float32)),
        grid=(N,),
        in_specs=[pl.BlockSpec((Ho, 2, Wo, 2, Cin), lambda n: (n, 0, 0, 0, 0)),
                  pl.BlockSpec((9 * Cin, C1), lambda n: (0, 0))],
        out_specs=(pl.BlockSpec((1, Ho, Wo, C1), lambda n: (n, 0, 0, 0)),
                   pl.BlockSpec((1, 1, C1), lambda n: (n, 0, 0)),
                   pl.BlockSpec((1, 1, C1), lambda n: (n, 0, 0))),
        scratch_shapes=[pltpu.VMEM((Ho + 2, Wo + 2, Cin), jnp.float32)],
        compiler_params=pltpu.CompilerParams(dimension_semantics=("parallel",)),
    )(x5, w1f)

    scale1, bias1 = _bn_affine(ps1, pq1, params["g1"], params["be1"], N * Ho * Wo)

    # --- call 2: BN1+ReLU + conv2 + BN2 stats ----------------------------
    y2, ps2, pq2 = pl.pallas_call(
        _bn_relu_conv_stats_kernel,
        out_shape=(jax.ShapeDtypeStruct((N, Ho * Wo, C2), jnp.float32),
                   jax.ShapeDtypeStruct((N, 1, C2), jnp.float32),
                   jax.ShapeDtypeStruct((N, 1, C2), jnp.float32)),
        grid=(N,),
        in_specs=[pl.BlockSpec((1, Ho, Wo, C1), lambda n: (n, 0, 0, 0)),
                  pl.BlockSpec((1, C1), lambda n: (0, 0)),
                  pl.BlockSpec((1, C1), lambda n: (0, 0)),
                  pl.BlockSpec((9 * C1, C2), lambda n: (0, 0))],
        out_specs=(pl.BlockSpec((1, Ho * Wo, C2), lambda n: (n, 0, 0)),
                   pl.BlockSpec((1, 1, C2), lambda n: (n, 0, 0)),
                   pl.BlockSpec((1, 1, C2), lambda n: (n, 0, 0))),
        scratch_shapes=[pltpu.VMEM((Ho + 2, Wo + 2, C1), jnp.float32)],
        compiler_params=pltpu.CompilerParams(dimension_semantics=("parallel",)),
    )(y1, scale1.reshape(1, C1), bias1.reshape(1, C1), w2f)

    scale2, bias2 = _bn_affine(ps2, pq2, params["g2"], params["be2"], N * Ho * Wo)

    # --- call 3: BN2+ReLU, lane-dense (rows, Wo*C2) layout ----------------
    y2v = y2.reshape(N * Ho, Wo * C2)
    s2t = jnp.tile(scale2, Wo).reshape(1, Wo * C2)   # per-channel params tiled over W
    b2t = jnp.tile(bias2, Wo).reshape(1, Wo * C2)
    out = pl.pallas_call(
        _bn_relu_kernel,
        out_shape=jax.ShapeDtypeStruct((N * Ho, Wo * C2), jnp.float32),
        grid=(N,),
        in_specs=[pl.BlockSpec((Ho, Wo * C2), lambda n: (n, 0)),
                  pl.BlockSpec((1, Wo * C2), lambda n: (0, 0)),
                  pl.BlockSpec((1, Wo * C2), lambda n: (0, 0))],
        out_specs=pl.BlockSpec((Ho, Wo * C2), lambda n: (n, 0)),
        compiler_params=pltpu.CompilerParams(dimension_semantics=("parallel",)),
    )(y2v, s2t, b2t)

    out = out.reshape(N, Ho, Wo, C2)
    return jnp.transpose(out, (0, 3, 1, 2))          # NHWC -> NCHW


# ----------------------------------------------------------------------------
# Pure-JAX reference (bf16 convs, f32 accumulation — same numerics path)
# ----------------------------------------------------------------------------
def unet_down_ref(params, x_nchw, eps=1e-5):
    x = jnp.transpose(x_nchw, (0, 2, 3, 1))
    y = lax.reduce_window(x, -jnp.inf, lax.max, (1, 2, 2, 1), (1, 2, 2, 1), "VALID")

    def conv(z, w, b):
        out = lax.conv_general_dilated(
            z.astype(jnp.bfloat16), w.astype(jnp.bfloat16), (1, 1), ((1, 1), (1, 1)),
            dimension_numbers=("NHWC", "HWIO", "NHWC"),
            preferred_element_type=jnp.float32)
        return out + b                              # bias kept here; cancelled by train-mode BN

    def bnr(z, g, be):
        mean = jnp.mean(z, axis=(0, 1, 2))
        var = jnp.mean((z - mean) ** 2, axis=(0, 1, 2))
        return jnp.maximum((z - mean) * lax.rsqrt(var + eps) * g + be, 0.0)

    y = bnr(conv(y, params["w1"], params["b1"]), params["g1"], params["be1"])
    y = bnr(conv(y, params["w2"], params["b2"]), params["g2"], params["be2"])
    return jnp.transpose(y, (0, 3, 1, 2))


if __name__ == "__main__":
    key = jax.random.PRNGKey(0)
    kx, kp = jax.random.split(key)

    N, Cin, Cout, S = 2, 4, 8, 16
    x = jax.random.normal(kx, (N, Cin, S, S), jnp.float32)   # NCHW, like PyTorch
    params = init_params(kp, Cin, Cout)

    out = jax.block_until_ready(unet_down(params, x))
    ref = jax.block_until_ready(unet_down_ref(params, x))

    assert out.shape == (N, Cout, S // 2, S // 2), out.shape
    if not bool(jnp.allclose(out, ref, atol=1e-2, rtol=1e-2)):
        raise AssertionError(
            f"mismatch vs reference, max abs diff = {float(jnp.max(jnp.abs(out - ref)))}")
    print("KERNEL_OK")
</pallas_src>

<mosaic_0001>
module attributes {stable_mosaic.version = 11 : i64} {
  func.func @_pool_conv_stats_kernel(%arg0: i32, %arg1: memref<8x2x8x2x4xf32, #tpu.memory_space<vmem>>, %arg2: memref<36x8xbf16, #tpu.memory_space<vmem>>, %arg3: memref<1x8x8x8xf32, #tpu.memory_space<vmem>>, %arg4: memref<1x1x8xf32, #tpu.memory_space<vmem>>, %arg5: memref<1x1x8xf32, #tpu.memory_space<vmem>>, %arg6: memref<10x10x4xf32, #tpu.memory_space<vmem>>) attributes {dimension_semantics = [#tpu.dimension_semantics<parallel>], iteration_bounds = array<i64: 2>, scalar_prefetch = 0 : i64, scratch_operands = 1 : i64, tpu.core_type = #tpu.core_type<tc>, window_params = [{transform_indices = @transform_0, window_bounds = array<i64: 8, 2, 8, 2, 4>}, {pipeline_mode = #tpu.pipeline_mode<synchronous>, transform_indices = @transform_1, window_bounds = array<i64: 36, 8>}, {transform_indices = @transform_2, window_bounds = array<i64: 1, 8, 8, 8>}, {transform_indices = @transform_3, window_bounds = array<i64: 1, 1, 8>}, {transform_indices = @transform_4, window_bounds = array<i64: 1, 1, 8>}]} {
    %c0 = arith.constant 0 : index
    %c0_0 = arith.constant 0 : index
    %c0_1 = arith.constant 0 : index
    %c0_2 = arith.constant 0 : index
    %c0_3 = arith.constant 0 : index
    %0 = vector.load %arg1[%c0, %c0_0, %c0_1, %c0_2, %c0_3] : memref<8x2x8x2x4xf32, #tpu.memory_space<vmem>>, vector<8x2x8x2x4xf32>
    %1 = vector.extract_strided_slice %0 {offsets = [0, 0, 0, 0, 0], sizes = [8, 1, 8, 2, 4], strides = [1, 1, 1, 1, 1]} : vector<8x2x8x2x4xf32> to vector<8x1x8x2x4xf32>
    %2 = vector.shape_cast %1 : vector<8x1x8x2x4xf32> to vector<8x8x2x4xf32>
    %3 = vector.extract_strided_slice %0 {offsets = [0, 1, 0, 0, 0], sizes = [8, 1, 8, 2, 4], strides = [1, 1, 1, 1, 1]} : vector<8x2x8x2x4xf32> to vector<8x1x8x2x4xf32>
    %4 = vector.shape_cast %3 : vector<8x1x8x2x4xf32> to vector<8x8x2x4xf32>
    %5 = arith.maximumf %2, %4 : vector<8x8x2x4xf32>
    %6 = vector.extract_strided_slice %5 {offsets = [0, 0, 0, 0], sizes = [8, 8, 1, 4], strides = [1, 1, 1, 1]} : vector<8x8x2x4xf32> to vector<8x8x1x4xf32>
    %7 = vector.shape_cast %6 : vector<8x8x1x4xf32> to vector<8x8x4xf32>
    %8 = vector.extract_strided_slice %5 {offsets = [0, 0, 1, 0], sizes = [8, 8, 1, 4], strides = [1, 1, 1, 1]} : vector<8x8x2x4xf32> to vector<8x8x1x4xf32>
    %9 = vector.shape_cast %8 : vector<8x8x1x4xf32> to vector<8x8x4xf32>
    %10 = arith.maximumf %7, %9 : vector<8x8x4xf32>
    %cst = arith.constant 0.000000e+00 : f32
    %11 = vector.broadcast %cst : f32 to vector<10x10x4xf32>
    %c0_4 = arith.constant 0 : index
    %c0_5 = arith.constant 0 : index
    %c0_6 = arith.constant 0 : index
    %12 = vector.load %arg6[%c0_4, %c0_5, %c0_6] : memref<10x10x4xf32, #tpu.memory_space<vmem>>, vector<10x10x4xf32>
    tpu.vector_store %arg6[%c0_4, %c0_5, %c0_6], %11 {strides = array<i32>} : memref<10x10x4xf32, #tpu.memory_space<vmem>>, vector<10x10x4xf32>,
    %c1 = arith.constant 1 : index
    %c1_7 = arith.constant 1 : index
    %c0_8 = arith.constant 0 : index
    %13 = vector.load %arg6[%c1, %c1_7, %c0_8] : memref<10x10x4xf32, #tpu.memory_space<vmem>>, vector<8x8x4xf32>
    tpu.vector_store %arg6[%c1, %c1_7, %c0_8], %10 {strides = array<i32>} : memref<10x10x4xf32, #tpu.memory_space<vmem>>, vector<8x8x4xf32>,
    %c0_9 = arith.constant 0 : index
    %c0_10 = arith.constant 0 : index
    %c0_11 = arith.constant 0 : index
    %14 = vector.load %arg6[%c0_9, %c0_10, %c0_11] : memref<10x10x4xf32, #tpu.memory_space<vmem>>, vector<8x8x4xf32>
    %c0_12 = arith.constant 0 : index
    %c1_13 = arith.constant 1 : index
    %c0_14 = arith.constant 0 : index
    %15 = vector.load %arg6[%c0_12, %c1_13, %c0_14] : memref<10x10x4xf32, #tpu.memory_space<vmem>>, vector<8x8x4xf32>
    %c0_15 = arith.constant 0 : index
    %c2 = arith.constant 2 : index
    %c0_16 = arith.constant 0 : index
    %16 = vector.load %arg6[%c0_15, %c2, %c0_16] : memref<10x10x4xf32, #tpu.memory_space<vmem>>, vector<8x8x4xf32>
    %c1_17 = arith.constant 1 : index
    %c0_18 = arith.constant 0 : index
    %c0_19 = arith.constant 0 : index
    %17 = vector.load %arg6[%c1_17, %c0_18, %c0_19] : memref<10x10x4xf32, #tpu.memory_space<vmem>>, vector<8x8x4xf32>
    %c1_20 = arith.constant 1 : index
    %c1_21 = arith.constant 1 : index
    %c0_22 = arith.constant 0 : index
    %18 = vector.load %arg6[%c1_20, %c1_21, %c0_22] : memref<10x10x4xf32, #tpu.memory_space<vmem>>, vector<8x8x4xf32>
    %c1_23 = arith.constant 1 : index
    %c2_24 = arith.constant 2 : index
    %c0_25 = arith.constant 0 : index
    %19 = vector.load %arg6[%c1_23, %c2_24, %c0_25] : memref<10x10x4xf32, #tpu.memory_space<vmem>>, vector<8x8x4xf32>
    %c2_26 = arith.constant 2 : index
    %c0_27 = arith.constant 0 : index
    %c0_28 = arith.constant 0 : index
    %20 = vector.load %arg6[%c2_26, %c0_27, %c0_28] : memref<10x10x4xf32, #tpu.memory_space<vmem>>, vector<8x8x4xf32>
    %c2_29 = arith.constant 2 : index
    %c1_30 = arith.constant 1 : index
    %c0_31 = arith.constant 0 : index
    %21 = vector.load %arg6[%c2_29, %c1_30, %c0_31] : memref<10x10x4xf32, #tpu.memory_space<vmem>>, vector<8x8x4xf32>
    %c2_32 = arith.constant 2 : index
    %c2_33 = arith.constant 2 : index
    %c0_34 = arith.constant 0 : index
    %22 = vector.load %arg6[%c2_32, %c2_33, %c0_34] : memref<10x10x4xf32, #tpu.memory_space<vmem>>, vector<8x8x4xf32>
    %23 = tpu.concatenate %14, %15, %16, %17, %18, %19, %20, %21, %22 in 2 : vector<8x8x4xf32>, vector<8x8x4xf32>, vector<8x8x4xf32>, vector<8x8x4xf32>, vector<8x8x4xf32>, vector<8x8x4xf32>, vector<8x8x4xf32>, vector<8x8x4xf32>, vector<8x8x4xf32> -> vector<8x8x36xf32>
    %24 = vector.shape_cast %23 : vector<8x8x36xf32> to vector<64x36xf32>
    %25 = arith.truncf %24 : vector<64x36xf32> to vector<64x36xbf16>
    %c0_35 = arith.constant 0 : index
    %c0_36 = arith.constant 0 : index
    %26 = vector.load %arg2[%c0_35, %c0_36] : memref<36x8xbf16, #tpu.memory_space<vmem>>, vector<36x8xbf16>
    %cst_37 = arith.constant dense<0.000000e+00> : vector<64x8xf32>
    %27 = tpu.matmul %25, %26, %cst_37 {dimension_numbers = #tpu.dot_dimension_numbers<[1], [0], [0], [1], [0, 0, 1, 1], [], []>} : vector<64x36xbf16>, vector<36x8xbf16>, vector<64x8xf32> -> vector<64x8xf32>
    %28 = vector.shape_cast %27 : vector<64x8xf32> to vector<8x8x8xf32>
    %c0_38 = arith.constant 0 : index
    %c0_39 = arith.constant 0 : index
    %c0_40 = arith.constant 0 : index
    %c0_41 = arith.constant 0 : index
    %29 = vector.load %arg3[%c0_38, %c0_39, %c0_40, %c0_41] : memref<1x8x8x8xf32, #tpu.memory_space<vmem>>, vector<1x8x8x8xf32>
    %30 = vector.shape_cast %29 : vector<1x8x8x8xf32> to vector<8x8x8xf32>
    %31 = vector.shape_cast %28 : vector<8x8x8xf32> to vector<1x8x8x8xf32>
    tpu.vector_store %arg3[%c0_38, %c0_39, %c0_40, %c0_41], %31 {strides = array<i32>} : memref<1x8x8x8xf32, #tpu.memory_space<vmem>>, vector<1x8x8x8xf32>,
    %cst_42 = arith.constant dense<0.000000e+00> : vector<8xf32>
    %32 = vector.multi_reduction <add>, %27, %cst_42 [0] : vector<64x8xf32> to vector<8xf32>
    %33 = vector.shape_cast %32 : vector<8xf32> to vector<1x8xf32>
    %c0_43 = arith.constant 0 : index
    %c0_44 = arith.constant 0 : index
    %c0_45 = arith.constant 0 : index
    %34 = vector.load %arg4[%c0_43, %c0_44, %c0_45] : memref<1x1x8xf32, #tpu.memory_space<vmem>>, vector<1x1x8xf32>
    %35 = vector.shape_cast %34 : vector<1x1x8xf32> to vector<1x8xf32>
    %36 = vector.shape_cast %33 : vector<1x8xf32> to vector<1x1x8xf32>
    tpu.vector_store %arg4[%c0_43, %c0_44, %c0_45], %36 {strides = array<i32>} : memref<1x1x8xf32, #tpu.memory_space<vmem>>, vector<1x1x8xf32>,
    %37 = arith.mulf %27, %27 : vector<64x8xf32>
    %cst_46 = arith.constant dense<0.000000e+00> : vector<8xf32>
    %38 = vector.multi_reduction <add>, %37, %cst_46 [0] : vector<64x8xf32> to vector<8xf32>
    %39 = vector.shape_cast %38 : vector<8xf32> to vector<1x8xf32>
    %c0_47 = arith.constant 0 : index
    %c0_48 = arith.constant 0 : index
    %c0_49 = arith.constant 0 : index
    %40 = vector.load %arg5[%c0_47, %c0_48, %c0_49] : memref<1x1x8xf32, #tpu.memory_space<vmem>>, vector<1x1x8xf32>
    %41 = vector.shape_cast %40 : vector<1x1x8xf32> to vector<1x8xf32>
    %42 = vector.shape_cast %39 : vector<1x8xf32> to vector<1x1x8xf32>
    tpu.vector_store %arg5[%c0_47, %c0_48, %c0_49], %42 {strides = array<i32>} : memref<1x1x8xf32, #tpu.memory_space<vmem>>, vector<1x1x8xf32>,
    return
  }
  func.func @transform_0(%arg0: i32) -> (i32, i32, i32, i32, i32) {
    %c0_i32 = arith.constant 0 : i32
    %c0_i32_0 = arith.constant 0 : i32
    %c0_i32_1 = arith.constant 0 : i32
    %c0_i32_2 = arith.constant 0 : i32
    %c0_i32_3 = arith.constant 0 : i32
    return %arg0, %c0_i32, %c0_i32_0, %c0_i32_1, %c0_i32_2 : i32, i32, i32, i32, i32
  }
  func.func @transform_1(%arg0: i32) -> (i32, i32) {
    %c0_i32 = arith.constant 0 : i32
    %c0_i32_0 = arith.constant 0 : i32
    %c0_i32_1 = arith.constant 0 : i32
    return %c0_i32, %c0_i32_0 : i32, i32
  }
  func.func @transform_2(%arg0: i32) -> (i32, i32, i32, i32) {
    %c0_i32 = arith.constant 0 : i32
    %c0_i32_0 = arith.constant 0 : i32
    %c0_i32_1 = arith.constant 0 : i32
    %c0_i32_2 = arith.constant 0 : i32
    return %arg0, %c0_i32, %c0_i32_0, %c0_i32_1 : i32, i32, i32, i32
  }
  func.func @transform_3(%arg0: i32) -> (i32, i32, i32) {
    %c0_i32 = arith.constant 0 : i32
    %c0_i32_0 = arith.constant 0 : i32
    %c0_i32_1 = arith.constant 0 : i32
    return %arg0, %c0_i32, %c0_i32_0 : i32, i32, i32
  }
  func.func @transform_4(%arg0: i32) -> (i32, i32, i32) {
    %c0_i32 = arith.constant 0 : i32
    %c0_i32_0 = arith.constant 0 : i32
    %c0_i32_1 = arith.constant 0 : i32
    return %arg0, %c0_i32, %c0_i32_0 : i32, i32, i32
  }
}

</mosaic_0001>

<bundles_post_ra>
// kernel: tpu_custom_call.1
= control target key start
LH: loop header
LB: loop body
LE: loop exit
PB: predicated region body
PF: predicated region fallthrough
CT: control target
= control target key end

     0   :  { %10 = vsyncpa [#allocation4], 0  ;;  %s2728_s0 = inlined_call_operand.vmem [shape: f32[16,2,8,2,4], index: 0, kind: input, shape index: {}]   ;;  %s2729_s1 = inlined_call_operand.vmem [shape: bf16[36,8], index: 1, kind: input, shape index: {}]   ;;  %s2730_s2 = inlined_call_operand.hbm [shape: f32[2,8,8,8], index: 2, kind: output, shape index: {0}]   ;;  %s2731_s3 = inlined_call_operand.hbm [shape: f32[2,1,8], index: 3, kind: output, shape index: {1}]   ;;  %s2732_s4 = inlined_call_operand.hbm [shape: f32[2,1,8], index: 4, kind: output, shape index: {2}]  }
   0x1   :  { %12 = vsyncpa [#allocation4 + $0x1], 0 }
   0x2   :  { %13 = vsyncpa [#allocation6], 0 }
   0x3   :  { %15 = vsyncpa [#allocation6 + $0x1], 0  ;;  %s2055_s15 = smov 0   ;;  %s2057_s16 = smov 0  }
   0x4   :  { %s2059_s17 = smov 0   ;;  %s2061_s18 = smov 0  }
   0x5 LB: > { %s2076_s19 = sadd.s32 4294967295, %s2015_s18   ;;  %s1618_s20 = sadd.s32 4294967294, %s2015_s18   ;;  %s2015_s18 = sphi %s2061_s18, %s2740_s18   ;;  %s2011_s17 = sphi %s2059_s17, %s2739_s17   ;;  %s2007_s16 = sphi %s2057_s16, %s2738_s16   ;;  %s2003_s15 = sphi %s2055_s15, %s2737_s15  }
   0x6   : > { %s2080_s21 = sadd.s32 1, %s2015_s18   ;;  %s75_s22 = sadd.s32 1, %s2011_s17 }
   0x7   : > { %s72_s23 = ssub.s32 %s2015_s18, %s2080_s21  ;;  %p85_p0 = scmp.ne.s32.totalorder %s2011_s17, %s2007_s16 }
   0x8   : > { %p73_p1 = scmp.eq.s32.totalorder %s72_s23, 0  ;;  %p86_p2 = scmp.eq.s32.totalorder %s2076_s19, 1 }
   0x9   : > { %p91_p3 = scmp.ne.s32.totalorder %s2007_s16, %s2003_s15  ;;  %p92_p4 = scmp.eq.s32.totalorder %s1618_s20, 1 }
   0xa   : > { %s2093_s24 = scalar_select %p73_p1, %s2011_s17, %s75_s22  }
   0xb   : > { %p2095_p5 = por %p86_p2, %p85_p0  ;;  %p2099_p6 = por %p92_p4, %p91_p3 }
   0xc   : > { %p1621_p7 = scmp.ge.s32.totalorder %s2015_s18, 1  ;;  %p175_p8 = scmp.lt.s32.totalorder %s2015_s18, 3 }
   0xe   : > { %p176_p9 = pnand %p1621_p7, %p175_p8 }
   0xf   : > { %s1623_s27 = sshll.u32 (!%p176_p9), %s2076_s19, 3  ;;  %vm666_vm0 = vcmask (!%p176_p9), 31744   ;;  %vm668_vm1 = vcmask (!%p176_p9), 25600   ;;  %v2017_v0 = vmov (!%p176_p9), 0.0   ;;  %vm753_vm2 = vcmask (!%p176_p9), 1041409   ;;  %s2018_s7 = smov (!%p176_p9), 8  }
  0x10   : > { %179 = sbr.rel (%p176_p9) target bundleno = 549 (0x225), region = 28  ;;  %p2106_p10 = scmp.lt.s32.totalorder (!%p176_p9), %s1623_s27, 15  ;;  %667 = vst.msk [vmem:[#allocation2] sm:$0xff] (!%p176_p9), %vm666_vm0, %v2017_v0  ;;  %670 = vst.msk [vmem:[#allocation2 + $0x10] sm:$0xff] (!%p176_p9), %vm666_vm0, %v2017_v0  ;;  %vm756_vm3 = vcmask (!%p176_p9), 1042434   ;;  %vm759_vm4 = vcmask (!%p176_p9), 1043459  }
  0x11   : > { %669 = vst.msk [vmem:[#allocation2 + $0x8] sm:$0x3] (!%p176_p9), %vm668_vm1, %v2017_v0  ;;  %671 = vst.msk [vmem:[#allocation2 + $0x18] sm:$0x3] (!%p176_p9), %vm668_vm1, %v2017_v0  ;;  %vm762_vm5 = vcmask (!%p176_p9), 1044484   ;;  %vm765_vm6 = vcmask (!%p176_p9), 1045509  }
  0x12   : > { %672 = vst.msk [vmem:[#allocation2 + $0x20] sm:$0xff] (!%p176_p9), %vm666_vm0, %v2017_v0  ;;  %674 = vst.msk [vmem:[#allocation2 + $0x30] sm:$0xff] (!%p176_p9), %vm666_vm0, %v2017_v0  ;;  %vm768_vm7 = vcmask (!%p176_p9), 1046534   ;;  %vm771_vm8 = vcmask (!%p176_p9), 1047559   ;;  %s2019_s8 = smov (!%p176_p9), 4   ;;  %s2020_s9 = smov (!%p176_p9), 12  }
  0x13   : > { %673 = vst.msk [vmem:[#allocation2 + $0x28] sm:$0x3] (!%p176_p9), %vm668_vm1, %v2017_v0  ;;  %675 = vst.msk [vmem:[#allocation2 + $0x38] sm:$0x3] (!%p176_p9), %vm668_vm1, %v2017_v0  ;;  %s2021_s10 = smov (!%p176_p9), 16   ;;  %s2022_s11 = smov (!%p176_p9), 20  }
  0x14   : > { %676 = vst.msk [vmem:[#allocation2 + $0x40] sm:$0xff] (!%p176_p9), %vm666_vm0, %v2017_v0  ;;  %678 = vst.msk [vmem:[#allocation2 + $0x50] sm:$0xff] (!%p176_p9), %vm666_vm0, %v2017_v0  ;;  %s2023_s12 = smov (!%p176_p9), 24   ;;  %s2024_s22 = smov (!%p176_p9), 28   ;;  %vm1325_vm9 = vcmask (!%p176_p9), 1041408   ;;  %vm1225_vm10 = vcmask (!%p176_p9), 64512  }
  0x15   : > { %677 = vst.msk [vmem:[#allocation2 + $0x48] sm:$0x3] (!%p176_p9), %vm668_vm1, %v2017_v0  ;;  %679 = vst.msk [vmem:[#allocation2 + $0x58] sm:$0x3] (!%p176_p9), %vm668_vm1, %v2017_v0  ;;  %s2025_s28 = smov (!%p176_p9), 32   ;;  %vm1234_vm11 = vcmask (!%p176_p9), 97280  }
  0x16   : > { %680 = vst.msk [vmem:[#allocation2 + $0x60] sm:$0xff] (!%p176_p9), %vm666_vm0, %v2017_v0  ;;  %682 = vst.msk [vmem:[#allocation2 + $0x70] sm:$0xff] (!%p176_p9), %vm666_vm0, %v2017_v0  ;;  %vm1243_vm12 = vcmask (!%p176_p9), 130048   ;;  %vm1252_vm13 = vcmask (!%p176_p9), 162816   ;;  %vm1261_vm14 = vcmask (!%p176_p9), 195584   ;;  %vm1270_vm15 = vcmask (!%p176_p9), 228352  }
  0x17   : > { %681 = vst.msk [vmem:[#allocation2 + $0x68] sm:$0x3] %vm668_vm1, %v2017_v0  ;;  %683 = vst.msk [vmem:[#allocation2 + $0x78] sm:$0x3] %vm668_vm1, %v2017_v0  ;;  %s2742_s27 = smov (!%p2106_p10, %s1623_s27), 15  ;;  %s2568_s5 = sand.u32 1, %s2007_s16  }
  0x18   : > { %684 = vst.msk [vmem:[#allocation2 + $0x80] sm:$0xff] %vm666_vm0, %v2017_v0  ;;  %686 = vst.msk [vmem:[#allocation2 + $0x90] sm:$0xff] %vm666_vm0, %v2017_v0  ;;  %s1640_s29 = sshll.u32 %s2742_s27, 5  ;;  %s1456_s14 = scalar_lea.sflag [#allocation4], %s2568_s5 }
  0x19   : > { %685 = vst.msk [vmem:[#allocation2 + $0x88] sm:$0x3] %vm668_vm1, %v2017_v0  ;;  %687 = vst.msk [vmem:[#allocation2 + $0x98] sm:$0x3] %vm668_vm1, %v2017_v0  ;;  %s2135_s6 = scalar_lea.vmem %s2728_s0, %s1640_s29  ;;  %vm1279_vm1 = vcmask 261120   ;;  %s2026_s23 = smov [#allocation3]  }
  0x1a   : > { %v218_v1 = vld [vmem:[%s2135_s6] sm:$0x3]  ;;  %v219_v2 = vld [vmem:[%s2135_s6 + $0x2] sm:$0x3]  ;;  %v220_v3 = vld [vmem:[%s2135_s6 + $0x4] sm:$0x3] }
  0x1b   : > { %v221_v4 = vld [vmem:[%s2135_s6 + $0x6] sm:$0x3]  ;;  %v222_v5 = vld [vmem:[%s2135_s6 + $0x8] sm:$0x3]  ;;  %v223_v6 = vld [vmem:[%s2135_s6 + $0xa] sm:$0x3] }
  0x1c   : > { %v224_v7 = vld [vmem:[%s2135_s6 + $0xc] sm:$0x3]  ;;  %v225_v8 = vld [vmem:[%s2135_s6 + $0xe] sm:$0x3]  ;;  %v226_v9 = vld [vmem:[%s2135_s6 + $0x10] sm:$0x3] }
  0x1d   : > { %v227_v10 = vld [vmem:[%s2135_s6 + $0x12] sm:$0x3]  ;;  %v228_v11 = vld [vmem:[%s2135_s6 + $0x14] sm:$0x3]  ;;  %v229_v12 = vld [vmem:[%s2135_s6 + $0x16] sm:$0x3]  ;;  %v346_v13 = vmax.f32 %v218_v1, %v226_v9 }
  0x1e   : > { %v230_v14 = vld [vmem:[%s2135_s6 + $0x18] sm:$0x3]  ;;  %v231_v15 = vld [vmem:[%s2135_s6 + $0x1a] sm:$0x3]  ;;  %v232_v16 = vld [vmem:[%s2135_s6 + $0x1c] sm:$0x3]  ;;  %v347_v17 = vmax.f32 %v219_v2, %v227_v10  ;;  %v348_v18 = vmax.f32 %v220_v3, %v228_v11  ;;  %v349_v19 = vmax.f32 %v221_v4, %v229_v12 }
  0x1f   : > { %v233_v20 = vld [vmem:[%s2135_s6 + $0x1e] sm:$0x3]  ;;  %v350_v21 = vmax.f32 %v222_v5, %v230_v14  ;;  %v351_v22 = vmax.f32 %v223_v6, %v231_v15  ;;  %v352_v23 = vmax.f32 %v224_v7, %v232_v16  ;;  %v474_v24 = vrot.slane %v346_v13, 1  ;;  %v234_v46 = vld [vmem:[%s2135_s6 + $0x20] sm:$0x3]  ;;  %s1897_s27 = sshll.u32 %s2026_s23, 4  ;;  %s1898_s27 = int_to_ptr.vmem [resolvable:$false] %s1897_s27 }
  0x20   : > { %v353_v25 = vmax.f32 %v225_v8, %v233_v20  ;;  %v475_v26 = vrot.slane %v347_v17, 1  ;;  %v476_v27 = vrot.slane %v348_v18, 1  ;;  %v477_v28 = vrot.slane %v349_v19, 1  ;;  %v235_v47 = vld [vmem:[%s2135_s6 + $0x22] sm:$0x3] }
  0x21   : > { %v478_v29 = vrot.slane %v350_v21, 1  ;;  %v479_v30 = vrot.slane %v351_v22, 1  ;;  %v480_v31 = vrot.slane %v352_v23, 1  ;;  %v602_v32 = vmax.f32 %v346_v13, %v474_v24  ;;  %v236_v48 = vld [vmem:[%s2135_s6 + $0x24] sm:$0x3] }
  0x22   : > { %v481_v33 = vrot.slane %v353_v25, 1  ;;  %v603_v34 = vmax.f32 %v347_v17, %v475_v26  ;;  %v604_v35 = vmax.f32 %v348_v18, %v476_v27  ;;  %v605_v36 = vmax.f32 %v349_v19, %v477_v28  ;;  %v242_v49 = vld [vmem:[%s2135_s6 + $0x30] sm:$0x3]  ;;  %v237_v53 = vld [vmem:[%s2135_s6 + $0x26] sm:$0x3] }
  0x23   : > { %v606_v37 = vmax.f32 %v350_v21, %v478_v29  ;;  %v607_v38 = vmax.f32 %v351_v22, %v479_v30  ;;  %v608_v39 = vmax.f32 %v352_v23, %v480_v31  ;;  %v238_v54 = vld [vmem:[%s2135_s6 + $0x28] sm:$0x3]  ;;  %v239_v55 = vld [vmem:[%s2135_s6 + $0x2a] sm:$0x3]  ;;  %v243_v56 = vld [vmem:[%s2135_s6 + $0x32] sm:$0x3]  ;;  %v354_v12 = vmax.f32 %v234_v46, %v242_v49 }
  0x24   : > { %v609_v40 = vmax.f32 %v353_v25, %v481_v33  ;;  %v752_v41 = vrot.slane %v603_v34, 7  ;;  %v755_v42 = vrot.slane %v604_v35, 6  ;;  %v758_v43 = vrot.slane %v605_v36, 5  ;;  %v244_v57 = vld [vmem:[%s2135_s6 + $0x34] sm:$0x3] }
  0x25   : > { %v761_v44 = vrot.slane %v606_v37, 4  ;;  %v764_v45 = vrot.slane %v607_v38, 3  ;;  %v767_v51 = vrot.slane %v608_v39, 2  ;;  %v240_v59 = vld [vmem:[%s2135_s6 + $0x2c] sm:$0x3]  ;;  %v355_v13 = vmax.f32 %v235_v47, %v243_v56 }
  0x26   : > { %v754_v50 = vsel %vm753_vm2, %v752_v41, %v602_v32  ;;  %v770_v52 = vrot.slane %v609_v40, 1  ;;  %v241_v60 = vld [vmem:[%s2135_s6 + $0x2e] sm:$0x3]  ;;  %v245_v61 = vld [vmem:[%s2135_s6 + $0x36] sm:$0x3]  ;;  %v356_v14 = vmax.f32 %v236_v48, %v244_v57  ;;  %v482_v39 = vrot.slane %v354_v12, 1 }
  0x27   : > { %v757_v58 = vsel %vm756_vm3, %v755_v42, %v754_v50  ;;  %v246_v62 = vld [vmem:[%s2135_s6 + $0x38] sm:$0x3]  ;;  %v247_v63 = vld [vmem:[%s2135_s6 + $0x3a] sm:$0x3]  ;;  %v248_v1 = vld [vmem:[%s2135_s6 + $0x3c] sm:$0x3]  ;;  %v357_v19 = vmax.f32 %v237_v53, %v245_v61 }
  0x28   : > { %v760_v0 = vsel %vm759_vm4, %v758_v43, %v757_v58  ;;  %v249_v2 = vld [vmem:[%s2135_s6 + $0x3e] sm:$0x3]  ;;  %v250_v3 = vld [vmem:[%s2135_s6 + $0x40] sm:$0x3]  ;;  %v251_v5 = vld [vmem:[%s2135_s6 + $0x42] sm:$0x3]  ;;  %v358_v20 = vmax.f32 %v238_v54, %v246_v62  ;;  %v359_v21 = vmax.f32 %v239_v55, %v247_v63  ;;  %v360_v26 = vmax.f32 %v240_v59, %v248_v1 }
  0x29   : > { %v763_v4 = vsel %vm762_vm5, %v761_v44, %v760_v0  ;;  %v252_v6 = vld [vmem:[%s2135_s6 + $0x44] sm:$0x3]  ;;  %v253_v7 = vld [vmem:[%s2135_s6 + $0x46] sm:$0x3]  ;;  %v254_v9 = vld [vmem:[%s2135_s6 + $0x48] sm:$0x3]  ;;  %v361_v27 = vmax.f32 %v241_v60, %v249_v2  ;;  %v610_v57 = vmax.f32 %v354_v12, %v482_v39 }
  0x2a   : > { %v766_v8 = vsel %vm765_vm6, %v764_v45, %v763_v4  ;;  %v255_v10 = vld [vmem:[%s2135_s6 + $0x4a] sm:$0x3]  ;;  %v256_v11 = vld [vmem:[%s2135_s6 + $0x4c] sm:$0x3]  ;;  %v257_v16 = vld [vmem:[%s2135_s6 + $0x4e] sm:$0x3] }
  0x2b   : > { %v769_v15 = vsel %vm768_vm7, %v767_v51, %v766_v8  ;;  %v258_v17 = vld [vmem:[%s2135_s6 + $0x50] sm:$0x3]  ;;  %v259_v18 = vld [vmem:[%s2135_s6 + $0x52] sm:$0x3]  ;;  %v260_v23 = vld [vmem:[%s2135_s6 + $0x54] sm:$0x3] }
  0x2c   : > { %v772_v22 = vsel %vm771_vm8, %v770_v52, %v769_v15  ;;  %v261_v24 = vld [vmem:[%s2135_s6 + $0x56] sm:$0x3]  ;;  %v262_v25 = vld [vmem:[%s2135_s6 + $0x58] sm:$0x3]  ;;  %v362_v28 = vmax.f32 %v250_v3, %v258_v17  ;;  %v263_v29 = vld [vmem:[%s2135_s6 + $0x5a] sm:$0x3]  ;;  %v363_v32 = vmax.f32 %v251_v5, %v259_v18  ;;  %v364_v33 = vmax.f32 %v252_v6, %v260_v23 }
  0x2d   : > { %880 = vst.msk [vmem:[#allocation2 + $0x11] sm:$0xff] %vm666_vm0, %v772_v22  ;;  %v264_v30 = vld [vmem:[%s2135_s6 + $0x5c] sm:$0x3]  ;;  %v265_v31 = vld [vmem:[%s2135_s6 + $0x5e] sm:$0x3]  ;;  %v365_v34 = vmax.f32 %v253_v7, %v261_v24  ;;  %v366_v35 = vmax.f32 %v254_v9, %v262_v25  ;;  %v367_v36 = vmax.f32 %v255_v10, %v263_v29  ;;  %v483_v40 = vrot.slane %v355_v13, 1 }
  0x2e   : > { %v368_v37 = vmax.f32 %v256_v11, %v264_v30  ;;  %v369_v38 = vmax.f32 %v257_v16, %v265_v31  ;;  %v484_v41 = vrot.slane %v356_v14, 1  ;;  %v485_v42 = vrot.slane %v357_v19, 1  ;;  %v904_v52 = vld [vmem:[#allocation2 + $0x2] sm:$0xff]  ;;  %v266_v12 = vld [vmem:[%s2135_s6 + $0x60] sm:$0x3] }
  0x2f   : > { %v486_v43 = vrot.slane %v358_v20, 1  ;;  %v487_v44 = vrot.slane %v359_v21, 1  ;;  %v488_v45 = vrot.slane %v360_v26, 1  ;;  %v489_v46 = vrot.slane %v361_v27, 1  ;;  %v896_v53 = vld [vmem:[#allocation2 + $0x1] sm:$0xff] }
  0x30   : > { %v490_v47 = vrot.slane %v362_v28, 1  ;;  %v491_v48 = vrot.slane %v363_v32, 1  ;;  %v492_v49 = vrot.slane %v364_v33, 1  ;;  %v493_v50 = vrot.slane %v365_v34, 1  ;;  %v267_v18 = vld [vmem:[%s2135_s6 + $0x62] sm:$0x3] }
  0x31   : > { %v494_v51 = vrot.slane %v366_v35, 1  ;;  %v495_v54 = vrot.slane %v367_v36, 1  ;;  %v496_v55 = vrot.slane %v368_v37, 1  ;;  %v497_v56 = vrot.slane %v369_v38, 1  ;;  %v269_v25 = vld [vmem:[%s2135_s6 + $0x66] sm:$0x3] }
  0x32   : > { %v611_v58 = vmax.f32 %v355_v13, %v483_v40  ;;  %v612_v59 = vmax.f32 %v356_v14, %v484_v41  ;;  %v613_v60 = vmax.f32 %v357_v19, %v485_v42  ;;  %v614_v61 = vmax.f32 %v358_v20, %v486_v43  ;;  %v274_v13 = vld [vmem:[%s2135_s6 + $0x70] sm:$0x3]  ;;  %v268_v19 = vld [vmem:[%s2135_s6 + $0x64] sm:$0x3]  ;;  %v275_v20 = vld [vmem:[%s2135_s6 + $0x72] sm:$0x3] }
  0x33   : > { %v615_v0 = vmax.f32 %v359_v21, %v487_v44  ;;  %v616_v1 = vmax.f32 %v360_v26, %v488_v45  ;;  %v2197_v2 = vmax.f32 %v361_v27, %v489_v46  ;;  %v618_v3 = vmax.f32 %v362_v28, %v490_v47  ;;  %v270_v26 = vld [vmem:[%s2135_s6 + $0x68] sm:$0x3]  ;;  %v276_v27 = vld [vmem:[%s2135_s6 + $0x74] sm:$0x3]  ;;  %v278_v39 = vld [vmem:[%s2135_s6 + $0x78] sm:$0x3] }
  0x34   : > { %v2193_v62 = vld [vmem:[#allocation2 + $0x12] sm:$0xff]  ;;  %v619_v6 = vmax.f32 %v363_v32, %v491_v48  ;;  %v620_v7 = vmax.f32 %v364_v33, %v492_v49  ;;  %v621_v8 = vmax.f32 %v365_v34, %v493_v50  ;;  %v622_v9 = vmax.f32 %v366_v35, %v494_v51  ;;  %v271_v32 = vld [vmem:[%s2135_s6 + $0x6a] sm:$0x3]  ;;  %v272_v33 = vld [vmem:[%s2135_s6 + $0x6c] sm:$0x3] }
  0x35   : > { %v2195_v63 = vld [vmem:[#allocation2 + $0x11] sm:$0xff]  ;;  %v1740_v4 = vpack.i.bf16 %v2193_v62, %v904_v52  ;;  %v623_v10 = vmax.f32 %v367_v36, %v495_v54  ;;  %v624_v11 = vmax.f32 %v368_v37, %v496_v55  ;;  %v625_v14 = vmax.f32 %v369_v38, %v497_v56  ;;  %v279_v43 = vld [vmem:[%s2135_s6 + $0x7a] sm:$0x3]  ;;  %v280_v44 = vld [vmem:[%s2135_s6 + $0x7c] sm:$0x3] }
  0x36   : > { %v1730_v5 = vpack.i.bf16 %v2195_v63, %v896_v53  ;;  %v773_v15 = vrot.slane %v611_v58, 7  ;;  %v775_v16 = vrot.slane %v612_v59, 6  ;;  %v777_v17 = vrot.slane %v613_v60, 5  ;;  %v277_v34 = vld [vmem:[%s2135_s6 + $0x76] sm:$0x3] }
  0x37   : > { %1741 = vrot.lane.b32.xlu1 %v1740_v4, %s2018_s7  ;;  %v779_v21 = vrot.slane %v614_v61, 4  ;;  %v781_v22 = vrot.slane %v615_v0, 3  ;;  %v783_v23 = vrot.slane %v616_v1, 2  ;;  %v785_v24 = vrot.slane %v2197_v2, 1  ;;  %v273_v48 = vld [vmem:[%s2135_s6 + $0x6e] sm:$0x3] }
  0x38   : > { %1731 = vrot.lane.b32.xlu0 %v1730_v5, %s2019_s8  ;;  %v774_v28 = vsel %vm753_vm2, %v773_v15, %v610_v57  ;;  %v787_v29 = vrot.slane %v619_v6, 7  ;;  %v789_v30 = vrot.slane %v620_v7, 6  ;;  %v791_v31 = vrot.slane %v621_v8, 5  ;;  %v281_v49 = vld [vmem:[%s2135_s6 + $0x7e] sm:$0x3] }
  0x39   : > { %v776_v35 = vsel %vm756_vm3, %v775_v16, %v774_v28  ;;  %v793_v36 = vrot.slane %v622_v9, 4  ;;  %v795_v37 = vrot.slane %v623_v10, 3  ;;  %v797_v38 = vrot.slane %v624_v11, 2  ;;  %v282_v6 = vld [vmem:[%s2135_s6 + $0x80] sm:$0x3] }
  0x3a   : > { %v778_v40 = vsel %vm759_vm4, %v777_v17, %v776_v35  ;;  %v788_v41 = vsel %vm753_vm2, %v787_v29, %v618_v3  ;;  %v799_v42 = vrot.slane %v625_v14, 1  ;;  %v370_v45 = vmax.f32 %v266_v12, %v274_v13  ;;  %v283_v11 = vld [vmem:[%s2135_s6 + $0x82] sm:$0x3]  ;;  %v284_v12 = vld [vmem:[%s2135_s6 + $0x84] sm:$0x3] }
  0x3b   : > { %v780_v46 = vsel %vm762_vm5, %v779_v21, %v778_v40  ;;  %v790_v47 = vsel %vm756_vm3, %v789_v30, %v788_v41  ;;  %v371_v50 = vmax.f32 %v267_v18, %v275_v20  ;;  %v372_v51 = vmax.f32 %v268_v19, %v276_v27  ;;  %v290_v13 = vld [vmem:[%s2135_s6 + $0x90] sm:$0x3]  ;;  %v285_v18 = vld [vmem:[%s2135_s6 + $0x86] sm:$0x3]  ;;  %v286_v19 = vld [vmem:[%s2135_s6 + $0x88] sm:$0x3] }
  0x3c   : > { %v782_v52 = vsel %vm765_vm6, %v781_v22, %v780_v46  ;;  %v792_v53 = vsel %vm759_vm4, %v791_v31, %v790_v47  ;;  %v373_v54 = vmax.f32 %v269_v25, %v277_v34  ;;  %v374_v55 = vmax.f32 %v270_v26, %v278_v39  ;;  %v287_v20 = vld [vmem:[%s2135_s6 + $0x8a] sm:$0x3]  ;;  %v2243_v25 = vld [vmem:[#allocation2 + $0x10] sm:$0xff]  ;;  %v295_v34 = vld [vmem:[%s2135_s6 + $0x9a] sm:$0x3] }
  0x3d   : > { %v784_v56 = vsel %vm768_vm7, %v783_v23, %v782_v52  ;;  %v794_v57 = vsel %vm762_vm5, %v793_v36, %v792_v53  ;;  %v375_v58 = vmax.f32 %v271_v32, %v279_v43  ;;  %v376_v59 = vmax.f32 %v272_v33, %v280_v44  ;;  %v291_v26 = vld [vmem:[%s2135_s6 + $0x92] sm:$0x3]  ;;  %v292_v27 = vld [vmem:[%s2135_s6 + $0x94] sm:$0x3]  ;;  %v293_v28 = vld [vmem:[%s2135_s6 + $0x96] sm:$0x3] }
  0x3e   : > { %v786_v60 = vsel %vm771_vm8, %v785_v24, %v784_v56  ;;  %v796_v61 = vsel %vm765_vm6, %v795_v37, %v794_v57  ;;  %v377_v0 = vmax.f32 %v273_v48, %v281_v49  ;;  %v498_v1 = vrot.slane %v370_v45, 1  ;;  %v288_v32 = vld [vmem:[%s2135_s6 + $0x8c] sm:$0x3]  ;;  %v294_v33 = vld [vmem:[%s2135_s6 + $0x98] sm:$0x3] }
  0x3f   : > { %v798_v2 = vsel %vm768_vm7, %v797_v38, %v796_v61  ;;  %881 = vst.msk [vmem:[#allocation2 + $0x21] sm:$0xff] %vm666_vm0, %v786_v60  ;;  %v499_v3 = vrot.slane %v371_v50, 1  ;;  %v500_v4 = vrot.slane %v372_v51, 1  ;;  %v501_v5 = vrot.slane %v373_v54, 1  ;;  %v289_v40 = vld [vmem:[%s2135_s6 + $0x8e] sm:$0x3] }
  0x40   : > { %v800_v7 = vsel %vm771_vm8, %v799_v42, %v798_v2  ;;  %v502_v8 = vrot.slane %v374_v55, 1  ;;  %v503_v9 = vrot.slane %v375_v58, 1  ;;  %v504_v10 = vrot.slane %v376_v59, 1  ;;  %v296_v43 = vld [vmem:[%s2135_s6 + $0x9c] sm:$0x3] }
  0x41   : > { %882 = vst.msk [vmem:[#allocation2 + $0x31] sm:$0xff] %vm666_vm0, %v800_v7  ;;  %v505_v14 = vrot.slane %v377_v0, 1  ;;  %v626_v15 = vmax.f32 %v370_v45, %v498_v1  ;;  %v627_v16 = vmax.f32 %v371_v50, %v499_v3  ;;  %v628_v17 = vmax.f32 %v372_v51, %v500_v4  ;;  %v297_v44 = vld [vmem:[%s2135_s6 + $0x9e] sm:$0x3] }
  0x42   : > { %v629_v21 = vmax.f32 %v373_v54, %v501_v5  ;;  %v630_v22 = vmax.f32 %v374_v55, %v502_v8  ;;  %v631_v23 = vmax.f32 %v375_v58, %v503_v9  ;;  %v632_v24 = vmax.f32 %v376_v59, %v504_v10 }
  0x43   : > { %v633_v29 = vmax.f32 %v377_v0, %v505_v14  ;;  %v801_v30 = vrot.slane %v627_v16, 7  ;;  %v803_v31 = vrot.slane %v628_v17, 6  ;;  %v378_v35 = vmax.f32 %v282_v6, %v290_v13  ;;  %v298_v14 = vld [vmem:[%s2135_s6 + $0xa0] sm:$0x3]  ;;  %v300_v16 = vld [vmem:[%s2135_s6 + $0xa4] sm:$0x3] }
  0x44   : > { %v805_v36 = vrot.slane %v629_v21, 5  ;;  %v807_v37 = vrot.slane %v630_v22, 4  ;;  %v809_v38 = vrot.slane %v631_v23, 3  ;;  %v811_v39 = vrot.slane %v632_v24, 2  ;;  %v306_v17 = vld [vmem:[%s2135_s6 + $0xb0] sm:$0x3] }
  0x45   : > { %v802_v41 = vsel %vm753_vm2, %v801_v30, %v626_v15  ;;  %v813_v42 = vrot.slane %v633_v29, 1  ;;  %v379_v45 = vmax.f32 %v283_v11, %v291_v26  ;;  %v380_v46 = vmax.f32 %v284_v12, %v292_v27  ;;  %v299_v15 = vld [vmem:[%s2135_s6 + $0xa2] sm:$0x3]  ;;  %v301_v24 = vld [vmem:[%s2135_s6 + $0xa6] sm:$0x3] }
  0x46   : > { %v2255_v47 = vld [vmem:[#allocation2 + $0x22] sm:$0xff]  ;;  %v804_v49 = vsel %vm756_vm3, %v803_v31, %v802_v41  ;;  %v381_v51 = vmax.f32 %v285_v18, %v293_v28  ;;  %v382_v52 = vmax.f32 %v286_v19, %v294_v33  ;;  %v383_v53 = vmax.f32 %v287_v20, %v295_v34  ;;  %v307_v18 = vld [vmem:[%s2135_s6 + $0xb2] sm:$0x3]  ;;  %v308_v19 = vld [vmem:[%s2135_s6 + $0xb4] sm:$0x3] }
  0x47   : > { %v2257_v48 = vld [vmem:[#allocation2 + $0x21] sm:$0xff]  ;;  %v806_v54 = vsel %vm759_vm4, %v805_v36, %v804_v49  ;;  %v1770_v57 = vpack.i.bf16 %v2255_v47, %v2193_v62  ;;  %v384_v61 = vmax.f32 %v288_v32, %v296_v43  ;;  %v385_v0 = vmax.f32 %v289_v40, %v297_v44  ;;  %v303_v27 = vld [vmem:[%s2135_s6 + $0xaa] sm:$0x3]  ;;  %v309_v28 = vld [vmem:[%s2135_s6 + $0xb6] sm:$0x3] }
  0x48   : > { %v2260_v50 = vld [vmem:[#allocation2 + $0x20] sm:$0xff]  ;;  %v1760_v56 = vpack.i.bf16 %v2257_v48, %v2195_v63  ;;  %v2269_v58 = vld [vmem:[#allocation2 + $0x32] sm:$0xff]  ;;  %v808_v60 = vsel %vm762_vm5, %v807_v37, %v806_v54  ;;  %v506_v1 = vrot.slane %v378_v35, 1  ;;  %v507_v5 = vrot.slane %v379_v45, 1  ;;  %v302_v26 = vld [vmem:[%s2135_s6 + $0xa8] sm:$0x3] }
  0x49   : > { %v1750_v55 = vpack.i.bf16 %v2260_v50, %v2243_v25  ;;  %v2271_v59 = vld [vmem:[#allocation2 + $0x31] sm:$0xff]  ;;  %v2276_v2 = vpack.i.bf16 %v2269_v58, %v2255_v47  ;;  %v810_v4 = vsel %vm765_vm6, %v809_v38, %v808_v60  ;;  %v508_v7 = vrot.slane %v380_v46, 1  ;;  %v311_v30 = vld [vmem:[%s2135_s6 + $0xba] sm:$0x3]  ;;  %v304_v36 = vld [vmem:[%s2135_s6 + $0xac] sm:$0x3] }
  0x4a   : > { %v2280_v3 = vpack.i.bf16 %v2271_v59, %v2257_v48  ;;  %v812_v6 = vsel %vm768_vm7, %v811_v39, %v810_v4  ;;  %v509_v8 = vrot.slane %v381_v51, 1  ;;  %v510_v9 = vrot.slane %v382_v52, 1  ;;  %v310_v29 = vld [vmem:[%s2135_s6 + $0xb8] sm:$0x3]  ;;  %v2302_v31 = vld [vmem:[#allocation2 + $0x30] sm:$0xff] }
  0x4b   : > { %1746 = vrot.lane.b32.xlu1 %v2276_v2, %s2018_s7  ;;  %v814_v10 = vsel %vm771_vm8, %v813_v42, %v812_v6  ;;  %v511_v11 = vrot.slane %v383_v53, 1  ;;  %v512_v12 = vrot.slane %v384_v61, 1  ;;  %v513_v13 = vrot.slane %v385_v0, 1  ;;  %v305_v37 = vld [vmem:[%s2135_s6 + $0xae] sm:$0x3] }
  0x4c   : > { %1736 = vrot.lane.b32.xlu0 %v2280_v3, %s2019_s8  ;;  %883 = vst.msk [vmem:[#allocation2 + $0x41] sm:$0xff] %vm666_vm0, %v814_v10  ;;  %v634_v20 = vmax.f32 %v378_v35, %v506_v1  ;;  %v635_v21 = vmax.f32 %v379_v45, %v507_v5  ;;  %v636_v22 = vmax.f32 %v380_v46, %v508_v7  ;;  %v312_v38 = vld [vmem:[%s2135_s6 + $0xbc] sm:$0x3]  ;;  %v313_v39 = vld [vmem:[%s2135_s6 + $0xbe] sm:$0x3] }
  0x4d   : > { %v637_v23 = vmax.f32 %v381_v51, %v509_v8  ;;  %v638_v32 = vmax.f32 %v382_v52, %v510_v9  ;;  %v639_v33 = vmax.f32 %v383_v53, %v511_v11  ;;  %v640_v34 = vmax.f32 %v384_v61, %v512_v12  ;;  %v314_v40 = vld [vmem:[%s2135_s6 + $0xc0] sm:$0x3]  ;;  %v315_v45 = vld [vmem:[%s2135_s6 + $0xc2] sm:$0x3]  ;;  %v316_v46 = vld [vmem:[%s2135_s6 + $0xc4] sm:$0x3] }
  0x4e   : > { %v2304_v35 = vmax.f32 %v385_v0, %v513_v13  ;;  %v815_v41 = vrot.slane %v635_v21, 7  ;;  %v817_v42 = vrot.slane %v636_v22, 6  ;;  %v317_v49 = vld [vmem:[%s2135_s6 + $0xc6] sm:$0x3]  ;;  %v322_v60 = vld [vmem:[%s2135_s6 + $0xd0] sm:$0x3]  ;;  %v387_v7 = vmax.f32 %v299_v15, %v307_v18 }
  0x4f   : > { %v819_v43 = vrot.slane %v637_v23, 5  ;;  %v821_v51 = vrot.slane %v638_v32, 4  ;;  %v823_v52 = vrot.slane %v639_v33, 3  ;;  %v825_v53 = vrot.slane %v640_v34, 2  ;;  %v318_v0 = vld [vmem:[%s2135_s6 + $0xc8] sm:$0x3] }
  0x50   : > { %1751 = vrot.lane.b32.xlu0 %v1750_v55, %s2020_s9  ;;  %v827_v54 = vrot.slane %v2304_v35, 1  ;;  %v816_v61 = vsel %vm753_vm2, %v815_v41, %v634_v20  ;;  %v319_v1 = vld [vmem:[%s2135_s6 + $0xca] sm:$0x3]  ;;  %v323_v4 = vld [vmem:[%s2135_s6 + $0xd2] sm:$0x3]  ;;  %v386_v55 = vmax.f32 %v298_v14, %v306_v17  ;;  %v388_v8 = vmax.f32 %v300_v16, %v308_v19 }
  0x51   : > { %v324_v5 = vld [vmem:[%s2135_s6 + $0xd4] sm:$0x3]  ;;  %v325_v6 = vld [vmem:[%s2135_s6 + $0xd6] sm:$0x3]  ;;  %v818_v9 = vsel %vm756_vm3, %v817_v42, %v816_v61  ;;  %v320_v10 = vld [vmem:[%s2135_s6 + $0xcc] sm:$0x3]  ;;  %v389_v13 = vmax.f32 %v301_v24, %v309_v28  ;;  %v390_v21 = vmax.f32 %v302_v26, %v310_v29  ;;  %v391_v22 = vmax.f32 %v303_v27, %v311_v30 }
  0x52   : > { %v321_v11 = vld [vmem:[%s2135_s6 + $0xce] sm:$0x3]  ;;  %v326_v12 = vld [vmem:[%s2135_s6 + $0xd8] sm:$0x3]  ;;  %v820_v20 = vsel %vm759_vm4, %v819_v43, %v818_v9  ;;  %v327_v23 = vld [vmem:[%s2135_s6 + $0xda] sm:$0x3]  ;;  %v392_v34 = vmax.f32 %v304_v36, %v312_v38  ;;  %v393_v35 = vmax.f32 %v305_v37, %v313_v39  ;;  %v394_v41 = vmax.f32 %v314_v40, %v322_v60 }
  0x53   : > { %v328_v32 = vld [vmem:[%s2135_s6 + $0xdc] sm:$0x3]  ;;  %v329_v33 = vld [vmem:[%s2135_s6 + $0xde] sm:$0x3]  ;;  %v2333_v44 = vld [vmem:[#allocation2 + $0x40] sm:$0xff]  ;;  %v822_v16 = vsel %vm762_vm5, %v821_v51, %v820_v20  ;;  %v395_v17 = vmax.f32 %v315_v45, %v323_v4  ;;  %v396_v18 = vmax.f32 %v316_v46, %v324_v5  ;;  %v397_v19 = vmax.f32 %v317_v49, %v325_v6 }
  0x54   : > { %v2335_v14 = vld [vmem:[#allocation2 + $0x41] sm:$0xff]  ;;  %1761 = vrot.lane.b32.xlu0 %v1760_v56, %s2021_s10  ;;  %v1755_v24 = vpack.i.bf16 %v2333_v44, %v2302_v31  ;;  %v824_v28 = vsel %vm765_vm6, %v823_v52, %v822_v16  ;;  %v398_v48 = vmax.f32 %v318_v0, %v326_v12  ;;  %v399_v56 = vmax.f32 %v319_v1, %v327_v23 }
  0x55   : > { %v2341_v15 = vld [vmem:[#allocation2 + $0x42] sm:$0xff]  ;;  %v1765_v26 = vpack.i.bf16 %v2335_v14, %v2271_v59  ;;  %v826_v63 = vsel %vm768_vm7, %v825_v53, %v824_v28  ;;  %v400_v29 = vmax.f32 %v320_v10, %v328_v32  ;;  %v401_v36 = vmax.f32 %v321_v11, %v329_v33  ;;  %v330_v16 = vld [vmem:[%s2135_s6 + $0xe0] sm:$0x3] }
  0x56   : > { %v1775_v27 = vpack.i.bf16 %v2341_v15, %v2269_v58  ;;  %1756 = vrot.lane.b32.xlu1 %v1755_v24, %s2020_s9  ;;  %v828_v30 = vsel %vm771_vm8, %v827_v54, %v826_v63  ;;  %v514_v37 = vrot.slane %v386_v55, 1  ;;  %v515_v38 = vrot.slane %v387_v7, 1  ;;  %v1890_v5 = vld [vmem:[%s2729_s1] sm:$0xff]  }
  0x57   : > { %884 = vst.msk [vmem:[#allocation2 + $0x51] sm:$0xff] %vm666_vm0, %v828_v30  ;;  %v516_v58 = vrot.slane %v388_v8, 1  ;;  %v517_v59 = vrot.slane %v389_v13, 1  ;;  %v518_v39 = vrot.slane %v390_v21, 1  ;;  %v519_v40 = vrot.slane %v391_v22, 1  ;;  %1649 = vmatprep.subr.bf16.mxu0 %v1890_v5  ;;  %1663 = vmatprep.subr.bf16.mxu1 %v1890_v5 }
  0x58   : > { %1771 = vrot.lane.b32.xlu0 %v1770_v57, %s2022_s11  ;;  %v520_v42 = vrot.slane %v392_v34, 1  ;;  %v521_v43 = vrot.slane %v393_v35, 1  ;;  %v522_v45 = vrot.slane %v394_v41, 1  ;;  %v523_v46 = vrot.slane %v395_v17, 1  ;;  %1650 = vmatpush3.bf16.msra.mxu0 %v1890_v5  ;;  %v332_v28 = vld [vmem:[%s2135_s6 + $0xe4] sm:$0x3] }
  0x59   : > { %v524_v49 = vrot.slane %v396_v18, 1  ;;  %v525_v51 = vrot.slane %v397_v19, 1  ;;  %v526_v52 = vrot.slane %v398_v48, 1  ;;  %v527_v53 = vrot.slane %v399_v56, 1  ;;  %v333_v63 = vld [vmem:[%s2135_s6 + $0xe6] sm:$0x3]  ;;  %1666 = vmatpush3.bf16.msra.mxu1 %v1890_v5 }
  0x5a   : > { %1766 = vrot.lane.b32.xlu1 %v1765_v26, %s2021_s10  ;;  %v528_v54 = vrot.slane %v400_v29, 1  ;;  %v529_v60 = vrot.slane %v401_v36, 1  ;;  %v642_v62 = vmax.f32 %v386_v55, %v514_v37  ;;  %v643_v47 = vmax.f32 %v387_v7, %v515_v38  ;;  %v334_v37 = vld [vmem:[%s2135_s6 + $0xe8] sm:$0x3]  ;;  %v335_v38 = vld [vmem:[%s2135_s6 + $0xea] sm:$0x3] }
  0x5b   : > { %v2736_v57 = vpack.i.bf16 %v2302_v31, %v2260_v50  ;;  %v644_v61 = vmax.f32 %v388_v8, %v516_v58  ;;  %v645_v0 = vmax.f32 %v389_v13, %v517_v59  ;;  %v646_v1 = vmax.f32 %v390_v21, %v518_v39  ;;  %v340_v58 = vld [vmem:[%s2135_s6 + $0xf4] sm:$0x3] }
  0x5c   : > { %v2364_v4 = vmax.f32 %v391_v22, %v519_v40  ;;  %v2369_v6 = vmax.f32 %v392_v34, %v520_v42  ;;  %v2371_v9 = vmax.f32 %v393_v35, %v521_v43  ;;  %v650_v55 = vmax.f32 %v394_v41, %v522_v45  ;;  %v336_v43 = vld [vmem:[%s2135_s6 + $0xec] sm:$0x3]  ;;  %v341_v45 = vld [vmem:[%s2135_s6 + $0xf6] sm:$0x3] }
  0x5d   : > { %1781 = vrot.lane.b32.xlu0 %v2736_v57, %s2023_s12  ;;  %v651_v7 = vmax.f32 %v395_v17, %v523_v46  ;;  %v652_v10 = vmax.f32 %v396_v18, %v524_v49  ;;  %v2373_v11 = vmax.f32 %v397_v19, %v525_v51  ;;  %v2375_v12 = vmax.f32 %v398_v48, %v526_v52  ;;  %v331_v17 = vld [vmem:[%s2135_s6 + $0xe2] sm:$0x3]  ;;  %v338_v18 = vld [vmem:[%s2135_s6 + $0xf0] sm:$0x3]  ;;  %v1891_v19 = vld [vmem:[%s2729_s1 + $0x8] sm:$0xff]  }
  0x5e   : > { %v2377_v8 = vmax.f32 %v399_v56, %v527_v53  ;;  %1776 = vrot.lane.b32.xlu1 %v1775_v27, %s2022_s11  ;;  %v2380_v13 = vld [vmem:[#allocation2 + $0x50] sm:$0xff]  ;;  %v2384_v22 = vmax.f32 %v400_v29, %v528_v54  ;;  %v2386_v20 = vmax.f32 %v401_v36, %v529_v60  ;;  %v829_v23 = vrot.slane %v643_v47, 7  ;;  %1651 = vmatprep.subr.bf16.mxu0 %v1891_v19  ;;  %v342_v53 = vld [vmem:[%s2135_s6 + $0xf8] sm:$0x3]  ;;  %v343_v54 = vld [vmem:[%s2135_s6 + $0xfa] sm:$0x3] }
  0x5f   : > { %v2382_v21 = vld [vmem:[#allocation2 + $0x51] sm:$0xff]  ;;  %v831_v32 = vrot.slane %v644_v61, 6  ;;  %v1785_v33 = vpack.i.bf16 %v2380_v13, %v2333_v44  ;;  %v833_v35 = vrot.slane %v645_v0, 5  ;;  %v835_v41 = vrot.slane %v646_v1, 4  ;;  %1664 = vmatprep.subr.bf16.mxu1 %v1891_v19  ;;  %1652 = vmatpush3.bf16.msra.mxu0 %v1891_v19  ;;  %v337_v47 = vld [vmem:[%s2135_s6 + $0xee] sm:$0x3] }
  0x60   : > { %v2392_v34 = vpack.i.bf16 %v2382_v21, %v2335_v14  ;;  %v830_v14 = vsel %vm753_vm2, %v829_v23, %v642_v62  ;;  %v837_v24 = vrot.slane %v2364_v4, 3  ;;  %v839_v26 = vrot.slane %v2369_v6, 2  ;;  %v2406_v27 = vld [vmem:[#allocation2 + $0x52] sm:$0xff]  ;;  %v344_v57 = vld [vmem:[%s2135_s6 + $0xfc] sm:$0x3]  ;;  %1667 = vmatpush3.bf16.msra.mxu1 %v1891_v19 }
  0x61   : > { %1791 = vrot.lane.b32.xlu0 %v2280_v3, %s2024_s22  ;;  %v841_v3 = vrot.slane %v2371_v9, 1  ;;  %v339_v48 = vld [vmem:[%s2135_s6 + $0xf2] sm:$0x3]  ;;  %v832_v56 = vsel %vm756_vm3, %v831_v32, %v830_v14  ;;  %v843_v29 = vrot.slane %v651_v7, 7  ;;  %v845_v30 = vrot.slane %v652_v10, 6 }
  0x62   : > { %v847_v36 = vrot.slane %v2373_v11, 5  ;;  %1786 = vrot.lane.b32.xlu1 %v1785_v33, %s2023_s12  ;;  %v834_v59 = vsel %vm759_vm4, %v833_v35, %v832_v56  ;;  %v849_v39 = vrot.slane %v2375_v12, 4  ;;  %v851_v40 = vrot.slane %v2377_v8, 3  ;;  %v345_v61 = vld [vmem:[%s2135_s6 + $0xfe] sm:$0x3]  ;;  %s1622_s6 = sshll.u32 %s2568_s5, 6 }
  0x63   : > { %v853_v42 = vrot.slane %v2384_v22, 2  ;;  %v836_v46 = vsel %vm762_vm5, %v835_v41, %v834_v59  ;;  %v844_v49 = vsel %vm753_vm2, %v843_v29, %v650_v55  ;;  %v855_v51 = vrot.slane %v2386_v20, 1 }
  0x64   : > { %v1810_v52 = vpack.i.bf16 %v2406_v27, %v2341_v15  ;;  %v838_v60 = vsel %vm765_vm6, %v837_v24, %v836_v46  ;;  %v846_v62 = vsel %vm756_vm3, %v845_v30, %v844_v49  ;;  %v402_v0 = vmax.f32 %v330_v16, %v338_v18 }
  0x65   : > { %1801 = vrot.lane.b32.xlu0 %v2276_v2, %s2025_s28  ;;  %v403_v2 = vmax.f32 %v331_v17, %v339_v48  ;;  %v840_v1 = vsel %vm768_vm7, %v839_v26, %v838_v60  ;;  %v848_v4 = vsel %vm759_vm4, %v847_v36, %v846_v62  ;;  %v404_v5 = vmax.f32 %v332_v28, %v340_v58 }
  0x66   : > { %v405_v6 = vmax.f32 %v333_v63, %v341_v45  ;;  %1796 = vrot.lane.b32.xlu1 %v2392_v34, %s2024_s22  ;;  %v842_v15 = vsel %vm771_vm8, %v841_v3, %v840_v1  ;;  %v850_v9 = vsel %vm762_vm5, %v849_v39, %v848_v4  ;;  %v406_v55 = vmax.f32 %v334_v37, %v342_v53 }
  0x67   : > { %v407_v7 = vmax.f32 %v335_v38, %v343_v54  ;;  %v852_v10 = vsel %vm765_vm6, %v851_v40, %v850_v9  ;;  %885 = vst.msk [vmem:[#allocation2 + $0x61] sm:$0xff] %vm666_vm0, %v842_v15  ;;  %v408_v11 = vmax.f32 %v336_v43, %v344_v57  ;;  %v409_v12 = vmax.f32 %v337_v47, %v345_v61  ;;  %v1892_v38 = vld [vmem:[%s2729_s1 + $0x10] ss:$0 sps:$4 sm:$0x33]  }
  0x68   : > { %v530_v8 = vrot.slane %v402_v0, 1  ;;  %v854_v22 = vsel %vm768_vm7, %v853_v42, %v852_v10  ;;  %v531_v20 = vrot.slane %v403_v2, 1  ;;  %v532_v23 = vrot.slane %v404_v5, 1  ;;  %1669 = vmatprep.subr.msk.bf16.mxu0 %vm1325_vm9, %v1892_v38  ;;  %1670 = vmatprep.subr.msk.bf16.mxu1 %vm1325_vm9, %v1892_v38  ;;  %v944_v15 = vld [vmem:[#allocation2 + $0x90] sm:$0xff] }
  0x69   : > { %1811 = vrot.lane.b32.xlu0 %v1810_v52, %s2025_s28  ;;  %v533_v32 = vrot.slane %v405_v6, 1  ;;  %v856_v33 = vsel %vm771_vm8, %v855_v51, %v854_v22  ;;  %v534_v35 = vrot.slane %v406_v55, 1  ;;  %v535_v41 = vrot.slane %v407_v7, 1  ;;  %v960_v10 = vld [vmem:[#allocation2 + $0x92] sm:$0xff] }
  0x6a   : > { %v536_v16 = vrot.slane %v408_v11, 1  ;;  %1806 = vrot.lane.b32.xlu1 %v2392_v34, %s2019_s8  ;;  %886 = vst.msk [vmem:[#allocation2 + $0x71] sm:$0xff] %vm666_vm0, %v856_v33  ;;  %v537_v17 = vrot.slane %v409_v12, 1  ;;  %v658_v18 = vmax.f32 %v402_v0, %v530_v8  ;;  %v659_v19 = vmax.f32 %v403_v2, %v531_v20 }
  0x6b   : > { %v660_v14 = vmax.f32 %v404_v5, %v532_v23  ;;  %v661_v24 = vmax.f32 %v405_v6, %v533_v32  ;;  %v662_v26 = vmax.f32 %v406_v55, %v534_v35  ;;  %v663_v3 = vmax.f32 %v407_v7, %v535_v41  ;;  %v952_v55 = vld [vmem:[#allocation2 + $0x91] sm:$0xff]  ;;  %v888_v41 = vld [vmem:[#allocation2] sm:$0xff] }
  0x6c   : > { %v664_v28 = vmax.f32 %v408_v11, %v536_v16  ;;  %v665_v63 = vmax.f32 %v409_v12, %v537_v17  ;;  %v857_v48 = vrot.slane %v659_v19, 7  ;;  %v1327_v62 = vsel %vm1325_vm9, %v1892_v38, 0 }
  0x6d   : > { %1821 = vrot.lane.b32.xlu0 %v1810_v52, %s2018_s7  ;;  %v859_v56 = vrot.slane %v660_v14, 6  ;;  %v861_v29 = vrot.slane %v661_v24, 5  ;;  %v863_v30 = vrot.slane %v662_v26, 4  ;;  %v865_v34 = vrot.slane %v663_v3, 3  ;;  %1654 = vmatpush3.bf16.msra.mxu0 %v1327_v62 }
  0x6e   : > { %v858_v36 = vsel %vm753_vm2, %v857_v48, %v658_v18  ;;  %v2453_v37 = vld [vmem:[#allocation2 + $0x60] sm:$0xff]  ;;  %v867_v39 = vrot.slane %v664_v28, 2  ;;  %v869_v43 = vrot.slane %v665_v63, 1  ;;  %1668 = vmatpush3.bf16.msra.mxu1 %v1327_v62  ;;  %vm1312_vm2 = vcmask 293888  }
  0x6f   : > { %v902_v58 = vld [vmem:[#allocation2 + $0x61] sm:$0xff]  ;;  %v860_v59 = vsel %vm756_vm3, %v859_v56, %v858_v36  ;;  %v1830_v40 = vpack.i.bf16 %v2453_v37, %v2380_v13 }
  0x70   : > { %v862_v42 = vsel %vm759_vm4, %v861_v29, %v860_v59  ;;  %v910_v46 = vld [vmem:[#allocation2 + $0x62] sm:$0xff]  ;;  %v1840_v52 = vpack.i.bf16 %v902_v58, %v2382_v21 }
  0x71   : > { %v903_v45 = vld [vmem:[#allocation2 + $0x71] sm:$0xff]  ;;  %v864_v51 = vsel %vm762_vm5, %v863_v30, %v862_v42  ;;  %1831 = vrot.lane.b32.xlu0 %v1830_v40, %s2020_s9  ;;  %v1850_v21 = vpack.i.bf16 %v910_v46, %v2406_v27 }
  0x72   : > { %v911_v49 = vld [vmem:[#allocation2 + $0x72] sm:$0xff]  ;;  %v1815_v53 = vpack.i.bf16 %v903_v45, %v902_v58  ;;  %v866_v54 = vsel %vm765_vm6, %v865_v34, %v864_v51 }
  0x73   : > { %v868_v60 = vsel %vm768_vm7, %v867_v39, %v866_v54  ;;  %v1825_v47 = vpack.i.bf16 %v911_v49, %v910_v46  ;;  %v2473_v61 = vld [vmem:[#allocation2 + $0x70] sm:$0xff] }
  0x74   : > { %1816 = vrot.lane.b32.xlu1 %v1815_v53, %s2019_s8  ;;  %v870_v57 = vsel %vm771_vm8, %v869_v43, %v868_v60  ;;  %v1860_v0 = vpack.i.bf16 %v2473_v61, %v2453_v37  ;;  %s2571_s8 = scalar_lea.vmem [#allocation3], %s1622_s6 }
  0x75   : > { %887 = vst.msk [vmem:[#allocation2 + $0x81] sm:$0xff] %vm666_vm0, %v870_v57  ;;  %1841 = vrot.lane.b32.xlu0 %v1840_v52, %s2021_s10 }
  0x78   : > { %1826 = vrot.lane.b32.xlu1 %v1825_v47, %s2018_s7 }
  0x79   : > { %1851 = vrot.lane.b32.xlu0 %v1850_v21, %s2022_s11 }
  0x7c   : > { %v919_v2 = vld [vmem:[#allocation2 + $0x80] sm:$0xff] }
  0x7d   : > { %v927_v1 = vld [vmem:[#allocation2 + $0x81] sm:$0xff]  ;;  %v1835_v4 = vpack.i.bf16 %v919_v2, %v2473_v61  ;;  %1861 = vrot.lane.b32.xlu0 %v1860_v0, %s2023_s12  ;;  %v1865_v9 = vpack.i.bf16 %v944_v15, %v919_v2 }
  0x7e   : > { %v1845_v5 = vpack.i.bf16 %v927_v1, %v903_v45  ;;  %v935_v27 = vld [vmem:[#allocation2 + $0x82] sm:$0xff]  ;;  %v1875_v7 = vpack.i.bf16 %v952_v55, %v927_v1 }
  0x7f   : > { %1836 = vrot.lane.b32.xlu1 %v1835_v4, %s2020_s9  ;;  %v1855_v6 = vpack.i.bf16 %v935_v27, %v911_v49  ;;  %v1885_v11 = vpack.i.bf16 %v960_v10, %v935_v27  ;;  %s1641_s9 = sshll.u32 %s2076_s19, 10 }
  0x80   : > { %s2596_s13 = scalar_lea.hbm %s2730_s2, %s1641_s9 }
  0x81   : > { %1871 = vrot.lane.b32.xlu0 %v1815_v53, %s2024_s22 }
  0x83   : > { %1846 = vrot.lane.b32.xlu1 %v1845_v5, %s2021_s10  ;;  %s1477_s10 = sshll.u32 %s2571_s8, 4  ;;  %s2601_s10 = int_to_ptr.vmem [resolvable:$true] %s1477_s10 }
  0x84   : > { %p1900_p0 = scmp.lt.s32.totalorder %s2601_s10, %s1898_s27 }
  0x85   : > { %1881 = vrot.lane.b32.xlu0 %v1825_v47, %s2025_s28 }
  0x87   : > { %1856 = vrot.lane.b32.xlu1 %v1855_v6, %s2022_s11 }
  0x8b   : > { %1866 = vrot.lane.b32.xlu1 %v1865_v9, %s2023_s12 }
  0x8f   : > { %1876 = vrot.lane.b32.xlu1 %v1875_v7, %s2024_s22  ;;  %s1893_s22 = scalar_lea.vmem %s2601_s10, 1024 }
  0x90   : > { %p1894_p11 = scmp.ne.s32.totalorder %s2601_s10, %s1893_s22 }
  0x92   : > { %p1895_p12 = pnand %p1894_p11, %p2095_p5 }
  0x93   : > { %1886 = vrot.lane.b32.xlu1 %v1885_v11, %s2025_s28  ;;  %s1899_s28 = scalar_lea.vmem %s1898_s27, 2048 }
  0x94   : > { %p1896_p13 = pneg %p1895_p12  ;;  %p1901_p1 = scmp.lt.s32.totalorder %s1899_s28, %s1893_s22 }
  0x96   : > { %p1902_p2 = por %p1901_p1, %p1900_p0 }
  0x98   : > { %p1903_p3 = pnand %p1902_p2, %p1896_p13 }
  0xa9   : > { %v1742_v8 = vpop.permute.xlu1 %1741 }
  0xaa   : > { %v1732_v12 = vpop.permute.xlu0 %1731  ;;  %v1743_v18 = vunpack.i.l.bf16 %v1742_v8  ;;  %v1744_v24 = vunpack.i.h.bf16 %v1742_v8 }
  0xab   : > { %v1733_v33 = vunpack.i.l.bf16 %v1732_v12  ;;  %v1734_v16 = vunpack.i.h.bf16 %v1732_v12 }
  0xad   : > { %v1217_v26 = vsel %vm666_vm0, %v888_v41, %v1733_v33  ;;  %v1218_v63 = vsel %vm666_vm0, %v2243_v25, %v1734_v16 }
  0xae   : > { %v1226_v59 = vsel %vm1225_vm10, %v1217_v26, %v1743_v18  ;;  %v1227_v39 = vsel %vm1225_vm10, %v1218_v63, %v1744_v24 }
  0xbd   : > { %v1747_v23 = vpop.permute.xlu1 %1746 }
  0xbe   : > { %v1737_v22 = vpop.permute.xlu0 %1736  ;;  %v1749_v29 = vunpack.i.h.bf16 %v1747_v23  ;;  %v1748_v30 = vunpack.i.l.bf16 %v1747_v23 }
  0xbf   : > { %v1739_v19 = vunpack.i.h.bf16 %v1737_v22  ;;  %v1738_v14 = vunpack.i.l.bf16 %v1737_v22 }
  0xc1   : > { %v1220_v38 = vsel %vm666_vm0, %v2302_v31, %v1739_v19  ;;  %v1219_v58 = vsel %vm666_vm0, %v2260_v50, %v1738_v14 }
  0xc2   : > { %v1752_v20 = vpop.permute.xlu0 %1751  ;;  %v1228_v50 = vsel %vm1225_vm10, %v1219_v58, %v1748_v30  ;;  %v1229_v52 = vsel %vm1225_vm10, %v1220_v38, %v1749_v29 }
  0xc3   : > { %v1753_v3 = vunpack.i.l.bf16 %v1752_v20  ;;  %v1754_v48 = vunpack.i.h.bf16 %v1752_v20 }
  0xc5   : > { %v1235_v25 = vsel %vm1234_vm11, %v1226_v59, %v1753_v3  ;;  %v1236_v46 = vsel %vm1234_vm11, %v1227_v39, %v1754_v48 }
  0xc6   : > { %v1762_v32 = vpop.permute.xlu0 %1761 }
  0xc7   : > { %v1764_v36 = vunpack.i.h.bf16 %v1762_v32  ;;  %v1763_v34 = vunpack.i.l.bf16 %v1762_v32 }
  0xc8   : > { %v2488_v35 = vpop.permute.xlu1 %1756 }
  0xc9   : > { %v1758_v45 = vunpack.i.l.bf16 %v2488_v35  ;;  %v1244_v53 = vsel %vm1243_vm12, %v1235_v25, %v1763_v34  ;;  %v1245_v54 = vsel %vm1243_vm12, %v1236_v46, %v1764_v36  ;;  %v1759_v60 = vunpack.i.h.bf16 %v2488_v35 }
  0xca   : > { %v1772_v17 = vpop.permute.xlu0 %1771 }
  0xcb   : > { %v1774_v42 = vunpack.i.h.bf16 %v1772_v17  ;;  %v1773_v43 = vunpack.i.l.bf16 %v1772_v17  ;;  %v1237_v5 = vsel %vm1234_vm11, %v1228_v50, %v1758_v45  ;;  %v1238_v12 = vsel %vm1234_vm11, %v1229_v52, %v1759_v60 }
  0xcc   : > { %v1767_v28 = vpop.permute.xlu1 %1766 }
  0xcd   : > { %v1768_v62 = vunpack.i.l.bf16 %v1767_v28  ;;  %v1769_v21 = vunpack.i.h.bf16 %v1767_v28  ;;  %v1253_v2 = vsel %vm1252_vm13, %v1244_v53, %v1773_v43  ;;  %v1254_v1 = vsel %vm1252_vm13, %v1245_v54, %v1774_v42 }
  0xcf   : > { %v1782_v56 = vpop.permute.xlu0 %1781  ;;  %v1246_v8 = vsel %vm1243_vm12, %v1237_v5, %v1768_v62  ;;  %v1247_v23 = vsel %vm1243_vm12, %v1238_v12, %v1769_v21 }
  0xd0   : > { %v1777_v40 = vpop.permute.xlu1 %1776  ;;  %v1784_v49 = vunpack.i.h.bf16 %v1782_v56  ;;  %v1783_v31 = vunpack.i.l.bf16 %v1782_v56 }
  0xd1   : > { %v1778_v0 = vunpack.i.l.bf16 %v1777_v40  ;;  %v1779_v27 = vunpack.i.h.bf16 %v1777_v40 }
  0xd2   : > { %v1262_v6 = vsel %vm1261_vm14, %v1253_v2, %v1783_v31  ;;  %v1263_v15 = vsel %vm1261_vm14, %v1254_v1, %v1784_v49 }
  0xd3   : > { %v1792_v51 = vpop.permute.xlu0 %1791  ;;  %v1255_v32 = vsel %vm1252_vm13, %v1246_v8, %v1778_v0  ;;  %v1256_v16 = vsel %vm1252_vm13, %v1247_v23, %v1779_v27 }
  0xd4   : > { %v1794_v47 = vunpack.i.h.bf16 %v1792_v51  ;;  %v1793_v57 = vunpack.i.l.bf16 %v1792_v51  ;;  %v1787_v4 = vpop.permute.xlu1 %1786 }
  0xd5   : > { %v1789_v55 = vunpack.i.h.bf16 %v1787_v4  ;;  %v1788_v7 = vunpack.i.l.bf16 %v1787_v4 }
  0xd6   : > { %v1271_v22 = vsel %vm1270_vm15, %v1262_v6, %v1793_v57  ;;  %v1272_v20 = vsel %vm1270_vm15, %v1263_v15, %v1794_v47 }
  0xd7   : > { %v1802_v9 = vpop.permute.xlu0 %1801  ;;  %v1264_v24 = vsel %vm1261_vm14, %v1255_v32, %v1788_v7  ;;  %v1265_v26 = vsel %vm1261_vm14, %v1256_v16, %v1789_v55 }
  0xd8   : > { %v1804_v10 = vunpack.i.h.bf16 %v1802_v9  ;;  %v1803_v11 = vunpack.i.l.bf16 %v1802_v9  ;;  %v1797_v33 = vpop.permute.xlu1 %1796 }
  0xd9   : > { %v1799_v17 = vunpack.i.h.bf16 %v1797_v33  ;;  %v1798_v18 = vunpack.i.l.bf16 %v1797_v33 }
  0xda   : > { %v1280_v35 = vsel %vm1279_vm1, %v1271_v22, %v1803_v11  ;;  %v1281_v41 = vsel %vm1279_vm1, %v1272_v20, %v1804_v10 }
  0xdb   : > { %v1812_v19 = vpop.permute.xlu0 %1811  ;;  %v1288_v14 = vpack.c.bf16 %v1281_v41, %v1280_v35  ;;  %v1273_v63 = vsel %vm1270_vm15, %v1264_v24, %v1798_v18  ;;  %v1274_v48 = vsel %vm1270_vm15, %v1265_v26, %v1799_v17 }
  0xdc   : > { %v1814_v3 = vunpack.i.h.bf16 %v1812_v19  ;;  %v1813_v28 = vunpack.i.l.bf16 %v1812_v19  ;;  %v1807_v34 = vpop.permute.xlu1 %1806 }
  0xdd   : > { %1655 = vmatprep.mubr.msk.bf16.mxu0 %vm1312_vm2, %v1288_v14  ;;  %v1809_v40 = vunpack.i.h.bf16 %v1807_v34  ;;  %v1808_v42 = vunpack.i.l.bf16 %v1807_v34 }
  0xde   : > { %v1282_v56 = vsel %vm1279_vm1, %v1273_v63, %v1813_v28  ;;  %v1283_v29 = vsel %vm1279_vm1, %v1274_v48, %v1814_v3 }
  0xdf   : > { %v1289_v30 = vpack.c.bf16 %v1283_v29, %v1282_v56  ;;  %v1822_v36 = vpop.permute.xlu0 %1821  ;;  %v1222_v53 = vsel %vm666_vm0, %v2380_v13, %v1809_v40  ;;  %v1221_v54 = vsel %vm666_vm0, %v2333_v44, %v1808_v42 }
  0xe0   : > { %v1824_v45 = vunpack.i.h.bf16 %v1822_v36  ;;  %v1823_v46 = vunpack.i.l.bf16 %v1822_v36 }
  0xe1   : > { %1656 = vmatmul.mubr.msk.bf16.vlgmr.msra.gmra.mrb[0].mxu0 %vm1312_vm2, %v1289_v30 }
  0xe2   : > { %v1231_v57 = vsel %vm1225_vm10, %v1222_v53, %v1824_v45  ;;  %v1230_v21 = vsel %vm1225_vm10, %v1221_v54, %v1823_v46 }
  0xe3   : > { %v1832_v38 = vpop.permute.xlu0 %1831 }
  0xe4   : > { %v1834_v31 = vunpack.i.h.bf16 %v1832_v38  ;;  %v1833_v51 = vunpack.i.l.bf16 %v1832_v38 }
  0xe6   : > { %v1817_v58 = vpop.permute.xlu1 %1816  ;;  %v1239_v1 = vsel %vm1234_vm11, %v1230_v21, %v1833_v51  ;;  %v1240_v4 = vsel %vm1234_vm11, %v1231_v57, %v1834_v31 }
  0xe7   : > { %v1842_v59 = vpop.permute.xlu0 %1841  ;;  %v1819_v35 = vunpack.i.h.bf16 %v1817_v58  ;;  %v1818_v41 = vunpack.i.l.bf16 %v1817_v58 }
  0xe8   : > { %v1844_v50 = vunpack.i.h.bf16 %v1842_v59  ;;  %v1843_v52 = vunpack.i.l.bf16 %v1842_v59 }
  0xe9   : > { %v1224_v3 = vsel %vm666_vm0, %v2473_v61, %v1819_v35  ;;  %v1223_v28 = vsel %vm666_vm0, %v2453_v37, %v1818_v41 }
  0xea   : > { %v1827_v39 = vpop.permute.xlu1 %1826  ;;  %v1248_v13 = vsel %vm1243_vm12, %v1239_v1, %v1843_v52  ;;  %v1249_v44 = vsel %vm1243_vm12, %v1240_v4, %v1844_v50 }
  0xeb   : > { %v1852_v25 = vpop.permute.xlu0 %1851  ;;  %v1829_v17 = vunpack.i.h.bf16 %v1827_v39  ;;  %v1828_v18 = vunpack.i.l.bf16 %v1827_v39 }
  0xec   : > { %v1854_v60 = vunpack.i.h.bf16 %v1852_v25  ;;  %v1853_v62 = vunpack.i.l.bf16 %v1852_v25 }
  0xed   : > { %v1232_v29 = vsel %vm1225_vm10, %v1223_v28, %v1828_v18  ;;  %v1233_v30 = vsel %vm1225_vm10, %v1224_v3, %v1829_v17 }
  0xee   : > { %v1257_v15 = vsel %vm1252_vm13, %v1248_v13, %v1853_v62  ;;  %v1258_v9 = vsel %vm1252_vm13, %v1249_v44, %v1854_v60 }
  0xef   : > { %v1862_v43 = vpop.permute.xlu0 %1861 }
  0xf0   : > { %v1864_v0 = vunpack.i.h.bf16 %v1862_v43  ;;  %v1863_v2 = vunpack.i.l.bf16 %v1862_v43 }
  0xf1   : > { %v1837_v49 = vpop.permute.xlu1 %1836 }
  0xf2   : > { %v1266_v7 = vsel %vm1261_vm14, %v1257_v15, %v1863_v2  ;;  %v1267_v10 = vsel %vm1261_vm14, %v1258_v9, %v1864_v0  ;;  %v1839_v19 = vunpack.i.h.bf16 %v1837_v49  ;;  %v1838_v14 = vunpack.i.l.bf16 %v1837_v49 }
  0xf3   : > { %v1872_v47 = vpop.permute.xlu0 %1871 }
  0xf4   : > { %v1874_v27 = vunpack.i.h.bf16 %v1872_v47  ;;  %v1873_v6 = vunpack.i.l.bf16 %v1872_v47  ;;  %v1241_v38 = vsel %vm1234_vm11, %v1232_v29, %v1838_v14  ;;  %v1242_v58 = vsel %vm1234_vm11, %v1233_v30, %v1839_v19 }
  0xf5   : > { %v1847_v5 = vpop.permute.xlu1 %1846 }
  0xf6   : > { %v1275_v22 = vsel %vm1270_vm15, %v1266_v7, %v1873_v6  ;;  %v1276_v20 = vsel %vm1270_vm15, %v1267_v10, %v1874_v27  ;;  %v1849_v24 = vunpack.i.h.bf16 %v1847_v5  ;;  %v1848_v26 = vunpack.i.l.bf16 %v1847_v5 }
  0xf7   : > { %v1882_v55 = vpop.permute.xlu0 %1881 }
  0xf8   : > { %v1884_v11 = vunpack.i.h.bf16 %v1882_v55  ;;  %v1883_v12 = vunpack.i.l.bf16 %v1882_v55  ;;  %v1250_v61 = vsel %vm1243_vm12, %v1241_v38, %v1848_v26  ;;  %v1251_v37 = vsel %vm1243_vm12, %v1242_v58, %v1849_v24 }
  0xf9   : > { %v1857_v8 = vpop.permute.xlu1 %1856 }
  0xfa   : > { %v1284_v23 = vsel %vm1279_vm1, %v1275_v22, %v1883_v12  ;;  %v1285_v32 = vsel %vm1279_vm1, %v1276_v20, %v1884_v11  ;;  %v1859_v63 = vunpack.i.h.bf16 %v1857_v8  ;;  %v1858_v48 = vunpack.i.l.bf16 %v1857_v8 }
  0xfb   : > { %v1290_v33 = vpack.c.bf16 %v1285_v32, %v1284_v23 }
  0xfc   : > { %v1259_v25 = vsel %vm1252_vm13, %v1250_v61, %v1858_v48  ;;  %v1260_v40 = vsel %vm1252_vm13, %v1251_v37, %v1859_v63 }
  0xfd   : > { %v1867_v16 = vpop.permute.xlu1 %1866  ;;  %1659 = vmatprep.mubr.msk.bf16.mxu1 %vm1312_vm2, %v1290_v33 }
  0xfe   : > { %v1869_v36 = vunpack.i.h.bf16 %v1867_v16  ;;  %v1868_v34 = vunpack.i.l.bf16 %v1867_v16 }
 0x100   : > { %v1268_v43 = vsel %vm1261_vm14, %v1259_v25, %v1868_v34  ;;  %v1269_v45 = vsel %vm1261_vm14, %v1260_v40, %v1869_v36 }
 0x101   : > { %v1877_v56 = vpop.permute.xlu1 %1876 }
 0x102   : > { %v1879_v59 = vunpack.i.h.bf16 %v1877_v56  ;;  %v1878_v39 = vunpack.i.l.bf16 %v1877_v56 }
 0x104   : > { %v1277_v31 = vsel %vm1270_vm15, %v1268_v43, %v1878_v39  ;;  %v1278_v51 = vsel %vm1270_vm15, %v1269_v45, %v1879_v59 }
 0x105   : > { %v1887_v42 = vpop.permute.xlu1 %1886 }
 0x106   : > { %v1889_v46 = vunpack.i.h.bf16 %v1887_v42  ;;  %v1888_v49 = vunpack.i.l.bf16 %v1887_v42 }
 0x108   : > { %v1286_v50 = vsel %vm1279_vm1, %v1277_v31, %v1888_v49  ;;  %v1287_v52 = vsel %vm1279_vm1, %v1278_v51, %v1889_v46 }
 0x109   : > { %v1291_v53 = vpack.c.bf16 %v1287_v52, %v1286_v50 }
 0x10b   : > { %1660 = vmatmul.mubr.msk.bf16.vlgmr.msra.gmra.mrb[0].mxu1 %vm1312_vm2, %v1291_v53 }
 0x1b4   : > { %v1657_v54 = vpop.f32.mrb[0].mxu0 }
 0x1b5   : > { %1396 = vst.msk [vmem:[%s2571_s8 + $0x10] sm:$0xff] %vm1225_vm10, %v1657_v54  ;;  %v1363_v60 = vpop.f32.mrb[1].mxu0  ;;  %v1427_v21 = vmul.f32 %v1657_v54, %v1657_v54  ;;  %v1405_v5 = vsel %vm1225_vm10, %v1657_v54, 0.0 }
 0x1b6   : > { %1394 = vst.msk [vmem:[%s2571_s8] sm:$0xff] %vm1225_vm10, %v1363_v60  ;;  %v1425_v62 = vmul.f32 %v1363_v60, %v1363_v60  ;;  %v1658_v47 = vpop.f32.mrb[2].mxu0  ;;  %v1402_v0 = vsel %vm1225_vm10, %v1363_v60, 0.0 }
 0x1b7   : > { %1397 = vst.msk [vmem:[%s2571_s8 + $0x18] sm:$0xff] %vm1225_vm10, %v1658_v47  ;;  %v1366_v57 = vpop.f32.mrb[3].mxu0  ;;  %v1428_v6 = vmul.f32 %v1658_v47, %v1658_v47  ;;  %v1436_v9 = vsel %vm1225_vm10, %v1427_v21, 0.0  ;;  %v1407_v55 = vsel %vm1225_vm10, %v1658_v47, 0.0 }
 0x1b8   : > { %1395 = vst.msk [vmem:[%s2571_s8 + $0x8] sm:$0xff] %vm1225_vm10, %v1366_v57  ;;  %v1403_v2 = vsel %vm1225_vm10, %v1366_v57, 0.0  ;;  %v1426_v1 = vmul.f32 %v1366_v57, %v1366_v57  ;;  %v1433_v27 = vsel %vm1225_vm10, %v1425_v62, 0.0 }
 0x1b9   : > { %v1404_v4 = vadd.f32 %v1403_v2, %v1402_v0  ;;  %v1438_v11 = vsel %vm1225_vm10, %v1428_v6, 0.0 }
 0x1ba   : > { %v1434_v13 = vsel %vm1225_vm10, %v1426_v1, 0.0 }
 0x1bb   : > { %v1406_v44 = vadd.f32 %v1405_v5, %v1404_v4  ;;  %v1435_v15 = vadd.f32 %v1434_v13, %v1433_v27 }
 0x1bd   : > { %v1437_v7 = vadd.f32 %v1436_v9, %v1435_v15  ;;  %v1408_v10 = vadd.f32 %v1407_v55, %v1406_v44 }
 0x1bf   : > { %v1439_v12 = vadd.f32 %v1438_v11, %v1437_v7 }
 0x1de   : > { %v1661_v8 = vpop.f32.mrb[0].mxu1 }
 0x1df   : > { %1400 = vst.msk [vmem:[%s2571_s8 + $0x30] sm:$0xff] %vm1225_vm10, %v1661_v8  ;;  %v1379_v22 = vpop.f32.mrb[1].mxu1  ;;  %v1431_v41 = vmul.f32 %v1661_v8, %v1661_v8 }
 0x1e0   : > { %1398 = vst.msk [vmem:[%s2571_s8 + $0x20] sm:$0xff] %vm1225_vm10, %v1379_v22  ;;  %v1409_v20 = vsel %vm1225_vm10, %v1379_v22, 0.0  ;;  %v1429_v23 = vmul.f32 %v1379_v22, %v1379_v22  ;;  %v1662_v32 = vpop.f32.mrb[2].mxu1 }
 0x1e1   : > { %v1410_v33 = vadd.f32 %v1409_v20, %v1408_v10  ;;  %1401 = vst.msk [vmem:[%s2571_s8 + $0x38] sm:$0xff] %vm1225_vm10, %v1662_v32  ;;  %v1382_v35 = vpop.f32.mrb[3].mxu1 }
 0x1e2   : > { %v1440_v16 = vsel %vm1225_vm10, %v1429_v23, 0.0  ;;  %1399 = vst.msk [vmem:[%s2571_s8 + $0x28] sm:$0xff] %vm1225_vm10, %v1382_v35  ;;  %v1411_v17 = vsel %vm1225_vm10, %v1382_v35, 0.0  ;;  %v1430_v18 = vmul.f32 %v1382_v35, %v1382_v35 }
 0x1e3   : > { %v1441_v19 = vadd.f32 %v1440_v16, %v1439_v12  ;;  %v1412_v14 = vadd.f32 %v1411_v17, %v1410_v33 }
 0x1e4   : > { %1906 = shalt.err (!%p1903_p3)
}
 0x1e5   : > { %s1907_s29 = scalar_lea.hbm %s2596_s13, 1024  ;;  %s1911_s8 = scalar_lea.hbm %s2730_s2, 2048 }
 0x1e6   : > { %p1908_p4 = scmp.ne.s32.totalorder %s2596_s13, %s1907_s29  ;;  %p1912_p9 = scmp.lt.u32.totalorder %s2596_s13, %s2730_s2 }
 0x1e7   : > { %p1913_p10 = scmp.lt.u32.totalorder %s1911_s8, %s1907_s29  ;;  %p1915_p12 = scmp.lt.u32.totalorder %s1907_s29, %s2596_s13 }
 0x1e8   : > { %p1909_p7 = pnand %p1908_p4, %p2095_p5 }
 0x1e9   : > { %p1914_p11 = por %p1913_p10, %p1912_p9 }
 0x1ea   : > { %p1910_p8 = pneg %p1909_p7 }
 0x1eb   : > { %p1916_p13 = por %p1915_p12, %p1914_p11 }
 0x1ed   : > { %p1917_p0 = pnand %p1916_p13, %p1910_p8 }
 0x1ef   : > { %1920 = shalt.err (!%p1917_p0)
}
 0x1f0   : > { %s2027_s12 = smov 128   ;;  %v1413_v24 = vsel %vm1225_vm10, %v1661_v8, 0.0  ;;  %v1432_v26 = vmul.f32 %v1662_v32, %v1662_v32  ;;  %v1442_v3 = vsel %vm1225_vm10, %v1430_v18, 0.0  ;;  %v1444_v48 = vsel %vm1225_vm10, %v1431_v41, 0.0  ;;  %s209_s22 = scalar_lea.vmem [#allocation7], %s2568_s5 }
 0x1f1   : > { %1671 = dma.vmem_to_hbm [thread:$0]  (%p2095_p5), %s2601_s10, 1024, %s2596_s13, %s1456_s14, %s2027_s12, %s2027_s12, %s2018_s7   ;;  %v1414_v28 = vadd.f32 %v1413_v24, %v1412_v14  ;;  %v1443_v63 = vadd.f32 %v1442_v3, %v1441_v19  ;;  %v1415_v56 = vsel %vm1225_vm10, %v1662_v32, 0.0  ;;  %vm1423_vm0 = vcmask 57344  }
 0x1f2   : > { %v1446_v36 = vsel %vm1225_vm10, %v1432_v26, 0.0  ;;  %s1460_s7 = sand.u32 1, %s2076_s19   ;;  %s1636_s10 = sshll.u32 %s2076_s19, 4 }
 0x1f3   : > { %v1416_v29 = vadd.f32 %v1415_v56, %v1414_v28  ;;  %v1445_v30 = vadd.f32 %v1444_v48, %v1443_v63  ;;  %s203_s13 = scalar_lea.vmem [#allocation5], %s2568_s5  ;;  %s1506_s23 = sshll.u32 %s209_s22, 4  ;;  %s2658_s23 = int_to_ptr.vmem [resolvable:$true] %s1506_s23 }
 0x1f4   : > { %s1493_s14 = sshll.u32 %s203_s13, 4  ;;  %s2648_s29 = scalar_lea.hbm %s2731_s3, %s1636_s10  ;;  %s2650_s14 = int_to_ptr.vmem [resolvable:$true] %s1493_s14 }
 0x1f5   : > { %v1417_v34 = vrot.slane %v1416_v29, 4  ;;  %v1447_v38 = vadd.f32 %v1446_v36, %v1445_v30  ;;  %s2656_s6 = scalar_lea.hbm %s2732_s4, %s1636_s10  ;;  %s2660_s8 = scalar_lea.sflag [#allocation6], %s1460_s7 }
 0x1f6   : > { %s1921_s9 = scalar_lea.vmem %s2650_s14, 16  ;;  %s2028_s11 = smov [#allocation5]  }
 0x1f7   : > { %v1418_v58 = vadd.f32 %v1417_v34, %v1416_v29  ;;  %v1448_v59 = vrot.slane %v1447_v38, 4  ;;  %p1922_p1 = scmp.ne.s32.totalorder %s2650_s14, %s1921_s9  ;;  %s1925_s12 = sshll.u32 %s2028_s11, 4  ;;  %s1926_s12 = int_to_ptr.vmem [resolvable:$false] %s1925_s12 }
 0x1f8   : > { %s1927_s27 = scalar_lea.vmem %s1926_s12, 32  ;;  %p1928_p4 = scmp.lt.s32.totalorder %s2650_s14, %s1926_s12 }
 0x1f9   : > { %v1419_v39 = vrot.slane %v1418_v58, 2  ;;  %v1449_v61 = vadd.f32 %v1448_v59, %v1447_v38  ;;  %p1923_p2 = pnand %p1922_p1, %p2095_p5  ;;  %p1929_p7 = scmp.lt.s32.totalorder %s1927_s27, %s1921_s9 }
 0x1fb   : > { %v1450_v37 = vrot.slane %v1449_v61, 2  ;;  %v1420_v25 = vadd.f32 %v1419_v39, %v1418_v58  ;;  %p1924_p3 = pneg %p1923_p2  ;;  %p1930_p8 = por %p1929_p7, %p1928_p4 }
 0x1fd   : > { %v1421_v40 = vrot.slane %v1420_v25, 1  ;;  %v1451_v42 = vadd.f32 %v1450_v37, %v1449_v61  ;;  %p1931_p9 = pnand %p1930_p8, %p1924_p3 }
 0x1ff   : > { %v1422_v43 = vadd.f32 %v1421_v40, %v1420_v25  ;;  %v1452_v45 = vrot.slane %v1451_v42, 1 }
 0x201   : > { %1424 = vst.msk [vmem:[%s203_s13] sm:$0x1] %vm1423_vm0, %v1422_v43  ;;  %v1453_v46 = vadd.f32 %v1452_v45, %v1451_v42 }
 0x202   : > { %1934 = shalt.err (!%p1931_p9)
}
 0x203   : > { %s1935_s7 = scalar_lea.hbm %s2648_s29, 16  ;;  %s1939_s28 = scalar_lea.hbm %s2731_s3, 32 }
 0x204   : > { %p1936_p10 = scmp.ne.s32.totalorder %s2648_s29, %s1935_s7  ;;  %p1940_p13 = scmp.lt.u32.totalorder %s2648_s29, %s2731_s3 }
 0x205   : > { %p1941_p0 = scmp.lt.u32.totalorder %s1939_s28, %s1935_s7  ;;  %p1943_p2 = scmp.lt.u32.totalorder %s1935_s7, %s2648_s29 }
 0x206   : > { %p1937_p11 = pnand %p1936_p10, %p2095_p5 }
 0x207   : > { %p1942_p1 = por %p1941_p0, %p1940_p13 }
 0x208   : > { %p1938_p12 = pneg %p1937_p11 }
 0x209   : > { %p1944_p3 = por %p1943_p2, %p1942_p1 }
 0x20b   : > { %p1945_p4 = pnand %p1944_p3, %p1938_p12 }
 0x20d   : > { %1948 = shalt.err (!%p1945_p4)
}
 0x20e   : > { %1672 = dma.vmem_to_hbm [thread:$0]  (%p2095_p5), %s2650_s14, 16, %s2648_s29, %s2660_s8   ;;  %1454 = vst.msk [vmem:[%s209_s22] sm:$0x1] %vm1423_vm0, %v1453_v46 }
 0x20f   : > { %s1949_s9 = scalar_lea.vmem %s2658_s23, 16  ;;  %s2029_s11 = smov [#allocation7]  }
 0x210   : > { %p1950_p7 = scmp.ne.s32.totalorder %s2658_s23, %s1949_s9  ;;  %s1953_s12 = sshll.u32 %s2029_s11, 4  ;;  %s1954_s12 = int_to_ptr.vmem [resolvable:$false] %s1953_s12 }
 0x211   : > { %s1955_s27 = scalar_lea.vmem %s1954_s12, 32  ;;  %p1956_p10 = scmp.lt.s32.totalorder %s2658_s23, %s1954_s12 }
 0x212   : > { %p1951_p8 = pnand %p1950_p7, %p2095_p5  ;;  %p1957_p11 = scmp.lt.s32.totalorder %s1955_s27, %s1949_s9 }
 0x214   : > { %p1952_p9 = pneg %p1951_p8  ;;  %p1958_p12 = por %p1957_p11, %p1956_p10 }
 0x216   : > { %p1959_p13 = pnand %p1958_p12, %p1952_p9 }
 0x218   : > { %1962 = shalt.err (!%p1959_p13)
}
 0x219   : > { %s1963_s5 = scalar_lea.hbm %s2656_s6, 16  ;;  %s1967_s29 = scalar_lea.hbm %s2732_s4, 32 }
 0x21a   : > { %p1964_p0 = scmp.ne.s32.totalorder %s2656_s6, %s1963_s5  ;;  %p1968_p3 = scmp.lt.u32.totalorder %s2656_s6, %s2732_s4 }
 0x21b   : > { %p1969_p4 = scmp.lt.u32.totalorder %s1967_s29, %s1963_s5  ;;  %p1971_p8 = scmp.lt.u32.totalorder %s1963_s5, %s2656_s6 }
 0x21c   : > { %p1965_p1 = pnand %p1964_p0, %p2095_p5 }
 0x21d   : > { %p1970_p7 = por %p1969_p4, %p1968_p3 }
 0x21e   : > { %p1966_p2 = pneg %p1965_p1 }
 0x21f   : > { %p1972_p9 = por %p1971_p8, %p1970_p7 }
 0x221   : > { %p1973_p10 = pnand %p1972_p9, %p1966_p2 }
 0x223   : > { %1976 = shalt.err (!%p1973_p10)
}
 0x224   : > { %1673 = dma.vmem_to_hbm [thread:$0]  (%p2095_p5), %s2658_s23, 16, %s2656_s6, %s2660_s8  }
 0x225 PF: > { %p1687_p11 = scmp.ge.s32.totalorder %s2015_s18, 2  ;;  %s1518_s13 = sand.u32 1, %s2003_s15  }
 0x226   : > { %s1519_s28 = scalar_lea.sflag [#allocation4], %s1518_s13 }
 0x227   : > { %p1678_p12 = pnand %p1687_p11, %p2099_p6 }
 0x229   : > { %1994 = dma.done.wait (!%p1678_p12), %s1519_s28, 1024  }
 0x22a   : > { %1996 = vsyncadd (!%p1678_p12), %s1519_s28, 4294966272  ;;  %s1527_s19 = sand.u32 1, %s1618_s20  }
 0x22b   : > { %s1528_s30 = scalar_lea.sflag [#allocation6], %s1527_s19 }
 0x22c   : > { %1998 = dma.done.wait (!%p1678_p12), %s1528_s30, 32  }
 0x22d   : > { %2000 = vsyncadd (!%p1678_p12), %s1528_s30, 4294967264  ;;  %p18_p5 = scmp.ge.s32.totalorder %s2080_s21, 4   ;;  %s2737_s15 = smov %s2007_s16 }
 0x22e   : > { %s2738_s16 = smov %s2011_s17  ;;  %s2739_s17 = smov %s2093_s24 }
 0x22f   : > { %s2740_s18 = smov %s2080_s21  ;;  %20 = sbr.rel (!%p18_p5) target bundleno = 5 (0x5), region = 97 }
 0x236   :  { %1540 = vsyncpa [#allocation4], 1 }
 0x237   :  { %1542 = vsyncpa [#allocation4 + $0x1], 1 }
 0x238   :  { %1543 = vsyncpa [#allocation6], 1 }
 0x239   :  { %1545 = vsyncpa [#allocation6 + $0x1], 1 }

</bundles_post_ra>
